<compile_context>
chip_gen: v6e
topology: v6e:2x2x1
jax: 0.10.0
libtpu: 0.0.40
codegen_flags: <defaults>
</compile_context>

<pallas_src>
import functools

import jax
import jax.numpy as jnp
from jax.experimental import pallas as pl
from jax.experimental.pallas import tpu as pltpu

# ---------------- model hyper-parameters (match the PyTorch __init__ defaults) -------------
VOCAB_SIZE = 20
EMB_DIM = 32          # embedding_dimention
LINEAR_UNITS = 64     # linear_units
LSTM_UNITS = 8        # lstm_units
MAX_NORM = 2.0        # max_norm
N_LAYERS = 2          # n_layers

BATCH = 2
WINDOW = 8            # sequence length T

GP = 128              # gate pitch: each of the 4 LSTM gates gets its own 128-lane block
G4 = 4 * GP           # 512 lanes of gate-pitched gates
CP = 128              # lane padding for the classifier / logits output
SP = 8                # sublane pitch for the per-step xproj rows (tile-aligned slices)


# ---------------------------------------------------------------------------
# Pallas kernel: embedding renorm + one-hot gather + 2-layer LSTM recurrence + classifier.
# ---------------------------------------------------------------------------
def lstm_prediction_kernel(
    onehot_ref,     # VMEM (T*SP, V)   one-hot rows, row t*SP+b selects ids[b, t] (rows b>=B zero)
    emb_ref,        # VMEM (V, E)      embedding table
    state_ref,      # VMEM (2, L, B, H) packed [h ; c] initial states
    w_proj_ref,     # VMEM (E+1, G4)   rows 0:E = wih0 (gate-pitched), row E = b0
    w_rec_ref,      # VMEM (3H+1, G4)  rows 0:H = whh0, H:2H = wih1, 2H:3H = whh1, row 3H = b1
    w_cls_ref,      # VMEM (H+LIN+2, CP) rows 0:H = wc1, H:H+LIN = wc2, then bc1, bc2
    logits_ref,     # out VMEM (B, CP)   lane-dense logits (first V lanes valid)
    state_out_ref,  # out VMEM (2, L, B, H) packed final [h ; c]
    xproj_ref,      # scratch VMEM (T*SP, G4): per-step layer-0 input projections (+ b0)
    *,
    mxu_bf16,       # cast the recurrent-dot operands to bf16 (f32 accumulation)
):
    H = LSTM_UNITS
    E = EMB_DIM
    T = WINDOW
    B = BATCH
    LIN = LINEAR_UNITS
    mxu_dtype = jnp.bfloat16 if mxu_bf16 else jnp.float32

    def mm(a, w):
        # MXU dot; operands may be bf16, accumulation always f32.
        return jnp.dot(a.astype(w.dtype), w, preferred_element_type=jnp.float32)

    # ---- preamble 1: renormalized embedding table -> hoisted layer-0 input projection ----
    # nn.Embedding(max_norm=2, norm_type=2): looked-up rows with L2 norm > max_norm are rescaled.
    # TODO(synk): nn.Embedding(max_norm=...) also renorms the looked-up rows IN PLACE in the
    # weight tensor; only the forward math is reproduced here (no weight mutation).
    emb = emb_ref[...]                                               # (V, E)
    norm = jnp.sqrt(jnp.sum(emb * emb, axis=-1, keepdims=True))      # (V, 1)
    scale = jnp.where(norm > MAX_NORM, MAX_NORM / (norm + 1e-7), 1.0)
    wih0 = w_proj_ref[0:E, :]                                        # (E, G4) gate-pitched
    b0 = w_proj_ref[E:E + 1, :]                                      # (1, G4)
    proj = jnp.dot(emb * scale, wih0, preferred_element_type=jnp.float32) + b0   # (V, G4)

    # ---- preamble 2: one-hot matmul gather (replaces 16 scalar-driven row copies) ----
    # One (T*SP, V) @ (V, G4) MXU dot; each valid one-hot row selects exactly one proj row
    # (which already includes b0).  Stored once; per-step slices below are tile-aligned.
    xproj_ref[...] = jnp.dot(onehot_ref[...], proj, preferred_element_type=jnp.float32)

    # ---- hoisted recurrent weights (loaded/cast once, loop-invariant) ----
    whh0 = w_rec_ref[0:H, :].astype(mxu_dtype)          # (H, G4) applied to h_l0(t)   [critical]
    wih1 = w_rec_ref[H:2 * H, :].astype(mxu_dtype)      # (H, G4) applied to h_l0(t)
    whh1 = w_rec_ref[2 * H:3 * H, :].astype(mxu_dtype)  # (H, G4) applied to h_l1(t)
    b1 = w_rec_ref[3 * H:3 * H + 1, :]                  # (1, G4) stays f32

    def cell(gates, c):
        # gate-pitched layout: gate k occupies lanes [k*GP, k*GP + H) -> vreg-aligned slices.
        i = jax.nn.sigmoid(gates[:, 0 * GP:0 * GP + H])
        f = jax.nn.sigmoid(gates[:, 1 * GP:1 * GP + H])
        g = jnp.tanh(gates[:, 2 * GP:2 * GP + H])
        o = jax.nn.sigmoid(gates[:, 3 * GP:3 * GP + H])
        c_new = f * c + i * g
        h_new = o * jnp.tanh(c_new)
        return h_new, c_new

    h_l0 = state_ref[0, 0]                      # (B, H)
    h_l1 = state_ref[0, 1]
    c_l0 = state_ref[1, 0]
    c_l1 = state_ref[1, 1]

    # t = 0 recurrent terms: dot only against the columns actually needed.
    rec0 = mm(h_l0, whh0)                       # (B, G4)  h_l0 @ whh0
    rec1 = mm(h_l1, whh1) + b1                  # (B, G4)  h_l1 @ whh1 + b1

    # ---- fully unrolled recurrence, last iteration peeled (no dead rec0/rec1 dots) ----
    for t in range(T - 1):
        gates0 = xproj_ref[t * SP:t * SP + B, :] + rec0        # layer-0 gates (x-proj precomputed)
        h_l0, c_l0 = cell(gates0, c_l0)
        rec0 = mm(h_l0, whh0)                                  # next step's critical-path term:
                                                               # dedicated small (B,H)@(H,G4) dot
        gates1 = mm(h_l0, wih1) + rec1                         # layer-1 input gates
        h_l1, c_l1 = cell(gates1, c_l1)
        rec1 = mm(h_l1, whh1) + b1                             # off the h_l0 critical path

    t = T - 1
    gates0 = xproj_ref[t * SP:t * SP + B, :] + rec0
    h_l0, c_l0 = cell(gates0, c_l0)
    gates1 = mm(h_l0, wih1) + rec1
    h_l1, c_l1 = cell(gates1, c_l1)

    # final (h, c) states, packed
    state_out_ref[0, 0] = h_l0
    state_out_ref[0, 1] = h_l1
    state_out_ref[1, 0] = c_l0
    state_out_ref[1, 1] = c_l1

    # ---- classifier: mean over the layer axis, then two Linear layers (f32, once per call) ----
    h_mean = (h_l0 + h_l1) * 0.5
    wc1 = w_cls_ref[0:H, 0:LIN]                                  # (H, LIN)
    wc2 = w_cls_ref[H:H + LIN, :]                                # (LIN, CP) (cols >= V are 0)
    bc1 = w_cls_ref[H + LIN:H + LIN + 1, 0:LIN]                  # (1, LIN)
    bc2 = w_cls_ref[H + LIN + 1:H + LIN + 2, :]                  # (1, CP)
    hidden = jnp.dot(h_mean, wc1, preferred_element_type=jnp.float32) + bc1
    logits_ref[...] = jnp.dot(hidden, wc2, preferred_element_type=jnp.float32) + bc2


# ---------------------------------------------------------------------------
# Parameter construction (deterministic, synthetic) — logical (PyTorch-like) layout.
# ---------------------------------------------------------------------------
def init_params(key):
    ks = jax.random.split(key, 12)
    H, E, L, V = LSTM_UNITS, EMB_DIM, LINEAR_UNITS, VOCAB_SIZE
    s = 1.0 / jnp.sqrt(H)

    emb_matrix = jax.random.normal(ks[0], (V, E), jnp.float32)
    emb_matrix = emb_matrix.at[V - 1].set(0.0)   # padding_idx = vocab_size - 1 -> zero row

    def u(k, shape):
        return jax.random.uniform(k, shape, jnp.float32, -s, s)

    return dict(
        emb_matrix=emb_matrix,
        # LSTM layer 0 (input E) and layer 1 (input H); stored pre-transposed (in, 4H).
        wih0=u(ks[1], (E, 4 * H)),
        whh0=u(ks[2], (H, 4 * H)),
        b0=u(ks[3], (1, 4 * H)) + u(ks[4], (1, 4 * H)),   # b_ih + b_hh folded
        wih1=u(ks[5], (H, 4 * H)),
        whh1=u(ks[6], (H, 4 * H)),
        b1=u(ks[7], (1, 4 * H)) + u(ks[8], (1, 4 * H)),
        # classifier, pre-transposed.
        wc1=u(ks[9], (H, L)),
        bc1=jnp.zeros((1, L), jnp.float32),
        wc2=u(ks[10], (L, V)),
        bc2=jnp.zeros((1, V), jnp.float32),
    )


# ---------------------------------------------------------------------------
# Pack logical params into the kernel's gate-pitched, concatenated buffers (done once).
# ---------------------------------------------------------------------------
def _gate_pitch(w):
    """Map (rows, 4H) with [i|f|g|o] blocks of width H to (rows, 4*GP): gate k -> lanes k*GP+[0,H)."""
    H = LSTM_UNITS
    out = jnp.zeros(w.shape[:-1] + (4 * GP,), w.dtype)
    for k in range(4):
        out = out.at[..., k * GP:k * GP + H].set(w[..., k * H:(k + 1) * H])
    return out


def pack_params(p):
    H, E, LIN, V = LSTM_UNITS, EMB_DIM, LINEAR_UNITS, VOCAB_SIZE

    # layer-0 input projection weights (+ bias b0 folded into the same buffer).
    w_proj = jnp.zeros((E + 1, G4), jnp.float32)
    w_proj = w_proj.at[0:E, :].set(_gate_pitch(p["wih0"]))
    w_proj = w_proj.at[E, :].set(_gate_pitch(p["b0"])[0])

    # recurrent block: whh0 / wih1 / whh1 stacked, then b1.
    w_rec = jnp.zeros((3 * H + 1, G4), jnp.float32)
    w_rec = w_rec.at[0:H, :].set(_gate_pitch(p["whh0"]))
    w_rec = w_rec.at[H:2 * H, :].set(_gate_pitch(p["wih1"]))
    w_rec = w_rec.at[2 * H:3 * H, :].set(_gate_pitch(p["whh1"]))
    w_rec = w_rec.at[3 * H, :].set(_gate_pitch(p["b1"])[0])

    # classifier block, lane-padded to CP = 128 (lane-dense logits store).
    w_cls = jnp.zeros((H + LIN + 2, CP), jnp.float32)
    w_cls = w_cls.at[0:H, 0:LIN].set(p["wc1"])
    w_cls = w_cls.at[H:H + LIN, 0:V].set(p["wc2"])
    w_cls = w_cls.at[H + LIN, 0:LIN].set(p["bc1"][0])
    w_cls = w_cls.at[H + LIN + 1, 0:V].set(p["bc2"][0])

    return {"emb": p["emb_matrix"], "w_proj": w_proj, "w_rec": w_rec, "w_cls": w_cls}


# ---------------------------------------------------------------------------
# pallas_call wrappers (bf16-MXU fast path + f32-MXU validation path).
# ---------------------------------------------------------------------------
_vmem = pl.BlockSpec(memory_space=pltpu.MemorySpace.VMEM)


def _make_predict_call(mxu_bf16):
    return pl.pallas_call(
        functools.partial(lstm_prediction_kernel, mxu_bf16=mxu_bf16),
        out_shape=(
            jax.ShapeDtypeStruct((BATCH, CP), jnp.float32),                       # padded logits
            jax.ShapeDtypeStruct((2, N_LAYERS, BATCH, LSTM_UNITS), jnp.float32),  # packed (h, c)
        ),
        in_specs=[_vmem, _vmem, _vmem, _vmem, _vmem, _vmem],
        out_specs=(_vmem, _vmem),
        scratch_shapes=[
            pltpu.VMEM((WINDOW * SP, G4), jnp.float32),   # gathered per-step projections
        ],
    )


_predict_call_bf16 = _make_predict_call(True)
_predict_call_f32 = _make_predict_call(False)


@functools.partial(jax.jit, static_argnames=("mxu_bf16",))
def prediction_network_forward(packed, x, h, c, mxu_bf16=True):
    ids = x.astype(jnp.int32)                                       # (B, T)
    # One-hot gather operand: row t*SP + b selects ids[b, t]; rows b >= B are zero padding so
    # every per-step slice in the kernel starts on a sublane-tile boundary.
    oh = jax.nn.one_hot(ids.T, VOCAB_SIZE, dtype=jnp.float32)       # (T, B, V)
    oh = jnp.pad(oh, ((0, 0), (0, SP - BATCH), (0, 0)))             # (T, SP, V)
    oh = oh.reshape(WINDOW * SP, VOCAB_SIZE)
    state_in = jnp.stack([h, c])                                    # (2, L, B, H)
    call = _predict_call_bf16 if mxu_bf16 else _predict_call_f32
    logits_pad, state_out = call(
        oh, packed["emb"], state_in, packed["w_proj"], packed["w_rec"], packed["w_cls"])
    return logits_pad[:, :VOCAB_SIZE], state_out[0], state_out[1]


# ---------------------------------------------------------------------------
# Pure-JAX reference (same math, logical params) for a sanity check.
# ---------------------------------------------------------------------------
def _embed_ref(params, x):
    emb = jnp.take(params["emb_matrix"], x, axis=0)            # (B, T, E)
    norm = jnp.linalg.norm(emb, axis=-1, keepdims=True)
    scale = jnp.where(norm > MAX_NORM, MAX_NORM / (norm + 1e-7), 1.0)
    return emb * scale


def reference_forward(params, x, h, c):
    emb = _embed_ref(params, x)                                # (B, T, E)
    H = LSTM_UNITS

    def cell(xv, hv, cv, wih, whh, b):
        g = xv @ wih + hv @ whh + b
        i = jax.nn.sigmoid(g[:, 0 * H:1 * H])
        f = jax.nn.sigmoid(g[:, 1 * H:2 * H])
        gg = jnp.tanh(g[:, 2 * H:3 * H])
        o = jax.nn.sigmoid(g[:, 3 * H:4 * H])
        cn = f * cv + i * gg
        return o * jnp.tanh(cn), cn

    h0, c0, h1, c1 = h[0], c[0], h[1], c[1]
    for t in range(emb.shape[1]):
        xt = emb[:, t, :]
        h0, c0 = cell(xt, h0, c0, params["wih0"], params["whh0"], params["b0"])
        h1, c1 = cell(h0, h1, c1, params["wih1"], params["whh1"], params["b1"])
    h_mean = (h0 + h1) * 0.5
    hid = h_mean @ params["wc1"] + params["bc1"]
    logits = hid @ params["wc2"] + params["bc2"]
    return logits, jnp.stack([h0, h1]), jnp.stack([c0, c1])


if __name__ == "__main__":
    key = jax.random.PRNGKey(0)
    kp, kx, kh, kc = jax.random.split(key, 4)
    params = init_params(kp)
    packed = pack_params(params)

    x = jax.random.randint(kx, (BATCH, WINDOW), 0, VOCAB_SIZE, dtype=jnp.int32)
    # Non-zero initial states to exercise the (h, c) path (zeros are the PyTorch default).
    h0 = 0.1 * jax.random.normal(kh, (N_LAYERS, BATCH, LSTM_UNITS), jnp.float32)
    c0 = 0.1 * jax.random.normal(kc, (N_LAYERS, BATCH, LSTM_UNITS), jnp.float32)

    ref_logits, ref_h, ref_c = reference_forward(params, x, h0, c0)

    # f32-MXU variant of the same kernel: tight numerical validation.
    logits32, h32, c32 = prediction_network_forward(packed, x, h0, c0, mxu_bf16=False)
    jax.block_until_ready((logits32, h32, c32))
    assert logits32.shape == (BATCH, VOCAB_SIZE)
    assert jnp.allclose(logits32, ref_logits, atol=1e-4, rtol=1e-4)
    assert jnp.allclose(h32, ref_h, atol=1e-5, rtol=1e-4)
    assert jnp.allclose(c32, ref_c, atol=1e-5, rtol=1e-4)

    # bf16-MXU-operand fast path (f32 accumulation / gate math): re-validated, looser tolerance.
    logits, h, c = prediction_network_forward(packed, x, h0, c0, mxu_bf16=True)
    jax.block_until_ready((logits, h, c))
    assert logits.shape == (BATCH, VOCAB_SIZE)
    assert h.shape == (N_LAYERS, BATCH, LSTM_UNITS)
    assert c.shape == (N_LAYERS, BATCH, LSTM_UNITS)
    assert jnp.allclose(logits, ref_logits, atol=2e-2, rtol=2e-2)
    assert jnp.allclose(h, ref_h, atol=2e-2, rtol=2e-2)
    assert jnp.allclose(c, ref_c, atol=2e-2, rtol=2e-2)

    print("KERNEL_OK")
</pallas_src>

<mosaic_0001>
module attributes {stable_mosaic.version = 11 : i64} {
  func.func @lstm_prediction_kernel(%arg0: memref<64x20xf32, #tpu.memory_space<vmem>>, %arg1: memref<20x32xf32, #tpu.memory_space<vmem>>, %arg2: memref<2x2x2x8xf32, #tpu.memory_space<vmem>>, %arg3: memref<33x512xf32, #tpu.memory_space<vmem>>, %arg4: memref<25x512xf32, #tpu.memory_space<vmem>>, %arg5: memref<74x128xf32, #tpu.memory_space<vmem>>, %arg6: memref<2x128xf32, #tpu.memory_space<vmem>>, %arg7: memref<2x2x2x8xf32, #tpu.memory_space<vmem>>, %arg8: memref<64x512xf32, #tpu.memory_space<vmem>>) attributes {dimension_semantics = [], scalar_prefetch = 0 : i64, scratch_operands = 1 : i64, tpu.core_type = #tpu.core_type<tc>} {
    %c0 = arith.constant 0 : index
    %c0_0 = arith.constant 0 : index
    %0 = vector.load %arg1[%c0, %c0_0] : memref<20x32xf32, #tpu.memory_space<vmem>>, vector<20x32xf32>
    %1 = arith.mulf %0, %0 : vector<20x32xf32>
    %cst = arith.constant dense<0.000000e+00> : vector<20xf32>
    %2 = vector.multi_reduction <add>, %1, %cst [1] : vector<20x32xf32> to vector<20xf32>
    %3 = vector.shape_cast %2 : vector<20xf32> to vector<20x1xf32>
    %4 = math.sqrt %3 : vector<20x1xf32>
    %cst_1 = arith.constant 2.000000e+00 : f32
    %5 = vector.broadcast %cst_1 : f32 to vector<20x1xf32>
    %6 = arith.cmpf ogt, %4, %5 : vector<20x1xf32>
    %cst_2 = arith.constant 1.000000e-07 : f32
    %7 = vector.broadcast %cst_2 : f32 to vector<20x1xf32>
    %8 = arith.addf %4, %7 : vector<20x1xf32>
    %cst_3 = arith.constant 2.000000e+00 : f32
    %9 = vector.broadcast %cst_3 : f32 to vector<20x1xf32>
    %10 = arith.divf %9, %8 : vector<20x1xf32>
    %cst_4 = arith.constant 1.000000e+00 : f32
    %11 = vector.broadcast %cst_4 : f32 to vector<20x1xf32>
    %12 = arith.select %6, %10, %11 : vector<20x1xi1>, vector<20x1xf32>
    %c0_5 = arith.constant 0 : index
    %c0_6 = arith.constant 0 : index
    %13 = vector.load %arg3[%c0_5, %c0_6] : memref<33x512xf32, #tpu.memory_space<vmem>>, vector<32x512xf32>
    %c32 = arith.constant 32 : index
    %c0_7 = arith.constant 0 : index
    %14 = vector.load %arg3[%c32, %c0_7] : memref<33x512xf32, #tpu.memory_space<vmem>>, vector<1x512xf32>
    %15 = vector.broadcast %12 : vector<20x1xf32> to vector<20x32xf32>
    %16 = arith.mulf %0, %15 : vector<20x32xf32>
    %cst_8 = arith.constant dense<0.000000e+00> : vector<20x512xf32>
    %17 = tpu.matmul %16, %13, %cst_8 {dimension_numbers = #tpu.dot_dimension_numbers<[1], [0], [0], [1], [0, 0, 1, 1], [], []>} : vector<20x32xf32>, vector<32x512xf32>, vector<20x512xf32> -> vector<20x512xf32>
    %18 = vector.broadcast %14 : vector<1x512xf32> to vector<20x512xf32>
    %19 = arith.addf %17, %18 : vector<20x512xf32>
    %c0_9 = arith.constant 0 : index
    %c0_10 = arith.constant 0 : index
    %20 = vector.load %arg0[%c0_9, %c0_10] : memref<64x20xf32, #tpu.memory_space<vmem>>, vector<64x20xf32>
    %cst_11 = arith.constant dense<0.000000e+00> : vector<64x512xf32>
    %21 = tpu.matmul %20, %19, %cst_11 {dimension_numbers = #tpu.dot_dimension_numbers<[1], [0], [0], [1], [0, 0, 1, 1], [], []>} : vector<64x20xf32>, vector<20x512xf32>, vector<64x512xf32> -> vector<64x512xf32>
    %c0_12 = arith.constant 0 : index
    %c0_13 = arith.constant 0 : index
    %22 = vector.load %arg8[%c0_12, %c0_13] : memref<64x512xf32, #tpu.memory_space<vmem>>, vector<64x512xf32>
    tpu.vector_store %arg8[%c0_12, %c0_13], %21 {strides = array<i32>} : memref<64x512xf32, #tpu.memory_space<vmem>>, vector<64x512xf32>,
    %c0_14 = arith.constant 0 : index
    %c0_15 = arith.constant 0 : index
    %23 = vector.load %arg4[%c0_14, %c0_15] : memref<25x512xf32, #tpu.memory_space<vmem>>, vector<8x512xf32>
    %c8 = arith.constant 8 : index
    %c0_16 = arith.constant 0 : index
    %24 = vector.load %arg4[%c8, %c0_16] : memref<25x512xf32, #tpu.memory_space<vmem>>, vector<8x512xf32>
    %c16 = arith.constant 16 : index
    %c0_17 = arith.constant 0 : index
    %25 = vector.load %arg4[%c16, %c0_17] : memref<25x512xf32, #tpu.memory_space<vmem>>, vector<8x512xf32>
    %c24 = arith.constant 24 : index
    %c0_18 = arith.constant 0 : index
    %26 = vector.load %arg4[%c24, %c0_18] : memref<25x512xf32, #tpu.memory_space<vmem>>, vector<1x512xf32>
    %c0_19 = arith.constant 0 : index
    %c0_20 = arith.constant 0 : index
    %c0_21 = arith.constant 0 : index
    %c0_22 = arith.constant 0 : index
    %27 = vector.load %arg2[%c0_19, %c0_20, %c0_21, %c0_22] : memref<2x2x2x8xf32, #tpu.memory_space<vmem>>, vector<1x1x2x8xf32>
    %28 = vector.shape_cast %27 : vector<1x1x2x8xf32> to vector<2x8xf32>
    %c0_23 = arith.constant 0 : index
    %c1 = arith.constant 1 : index
    %c0_24 = arith.constant 0 : index
    %c0_25 = arith.constant 0 : index
    %29 = vector.load %arg2[%c0_23, %c1, %c0_24, %c0_25] : memref<2x2x2x8xf32, #tpu.memory_space<vmem>>, vector<1x1x2x8xf32>
    %30 = vector.shape_cast %29 : vector<1x1x2x8xf32> to vector<2x8xf32>
    %c1_26 = arith.constant 1 : index
    %c0_27 = arith.constant 0 : index
    %c0_28 = arith.constant 0 : index
    %c0_29 = arith.constant 0 : index
    %31 = vector.load %arg2[%c1_26, %c0_27, %c0_28, %c0_29] : memref<2x2x2x8xf32, #tpu.memory_space<vmem>>, vector<1x1x2x8xf32>
    %32 = vector.shape_cast %31 : vector<1x1x2x8xf32> to vector<2x8xf32>
    %c1_30 = arith.constant 1 : index
    %c1_31 = arith.constant 1 : index
    %c0_32 = arith.constant 0 : index
    %c0_33 = arith.constant 0 : index
    %33 = vector.load %arg2[%c1_30, %c1_31, %c0_32, %c0_33] : memref<2x2x2x8xf32, #tpu.memory_space<vmem>>, vector<1x1x2x8xf32>
    %34 = vector.shape_cast %33 : vector<1x1x2x8xf32> to vector<2x8xf32>
    %cst_34 = arith.constant dense<0.000000e+00> : vector<2x512xf32>
    %35 = tpu.matmul %28, %23, %cst_34 {dimension_numbers = #tpu.dot_dimension_numbers<[1], [0], [0], [1], [0, 0, 1, 1], [], []>} : vector<2x8xf32>, vector<8x512xf32>, vector<2x512xf32> -> vector<2x512xf32>
    %cst_35 = arith.constant dense<0.000000e+00> : vector<2x512xf32>
    %36 = tpu.matmul %30, %25, %cst_35 {dimension_numbers = #tpu.dot_dimension_numbers<[1], [0], [0], [1], [0, 0, 1, 1], [], []>} : vector<2x8xf32>, vector<8x512xf32>, vector<2x512xf32> -> vector<2x512xf32>
    %37 = vector.broadcast %26 : vector<1x512xf32> to vector<2x512xf32>
    %38 = arith.addf %36, %37 : vector<2x512xf32>
    %c0_36 = arith.constant 0 : index
    %c0_37 = arith.constant 0 : index
    %39 = vector.load %arg8[%c0_36, %c0_37] : memref<64x512xf32, #tpu.memory_space<vmem>>, vector<2x512xf32>
    %40 = arith.addf %39, %35 : vector<2x512xf32>
    %41 = vector.extract_strided_slice %40 {offsets = [0, 0], sizes = [2, 8], strides = [1, 1]} : vector<2x512xf32> to vector<2x8xf32>
    %42 = arith.negf %41 : vector<2x8xf32>
    %43 = math.exp %42 : vector<2x8xf32>
    %cst_38 = arith.constant 1.000000e+00 : f32
    %44 = vector.broadcast %cst_38 : f32 to vector<2x8xf32>
    %45 = arith.addf %44, %43 : vector<2x8xf32>
    %46 = arith.divf %44, %45 : vector<2x8xf32>
    %47 = vector.extract_strided_slice %40 {offsets = [0, 128], sizes = [2, 8], strides = [1, 1]} : vector<2x512xf32> to vector<2x8xf32>
    %48 = arith.negf %47 : vector<2x8xf32>
    %49 = math.exp %48 : vector<2x8xf32>
    %cst_39 = arith.constant 1.000000e+00 : f32
    %50 = vector.broadcast %cst_39 : f32 to vector<2x8xf32>
    %51 = arith.addf %50, %49 : vector<2x8xf32>
    %52 = arith.divf %50, %51 : vector<2x8xf32>
    %53 = vector.extract_strided_slice %40 {offsets = [0, 256], sizes = [2, 8], strides = [1, 1]} : vector<2x512xf32> to vector<2x8xf32>
    %54 = math.tanh %53 : vector<2x8xf32>
    %55 = vector.extract_strided_slice %40 {offsets = [0, 384], sizes = [2, 8], strides = [1, 1]} : vector<2x512xf32> to vector<2x8xf32>
    %56 = arith.negf %55 : vector<2x8xf32>
    %57 = math.exp %56 : vector<2x8xf32>
    %cst_40 = arith.constant 1.000000e+00 : f32
    %58 = vector.broadcast %cst_40 : f32 to vector<2x8xf32>
    %59 = arith.addf %58, %57 : vector<2x8xf32>
    %60 = arith.divf %58, %59 : vector<2x8xf32>
    %61 = arith.mulf %52, %32 : vector<2x8xf32>
    %62 = arith.mulf %46, %54 : vector<2x8xf32>
    %63 = arith.addf %61, %62 : vector<2x8xf32>
    %64 = math.tanh %63 : vector<2x8xf32>
    %65 = arith.mulf %60, %64 : vector<2x8xf32>
    %cst_41 = arith.constant dense<0.000000e+00> : vector<2x512xf32>
    %66 = tpu.matmul %65, %23, %cst_41 {dimension_numbers = #tpu.dot_dimension_numbers<[1], [0], [0], [1], [0, 0, 1, 1], [], []>} : vector<2x8xf32>, vector<8x512xf32>, vector<2x512xf32> -> vector<2x512xf32>
    %cst_42 = arith.constant dense<0.000000e+00> : vector<2x512xf32>
    %67 = tpu.matmul %65, %24, %cst_42 {dimension_numbers = #tpu.dot_dimension_numbers<[1], [0], [0], [1], [0, 0, 1, 1], [], []>} : vector<2x8xf32>, vector<8x512xf32>, vector<2x512xf32> -> vector<2x512xf32>
    %68 = arith.addf %67, %38 : vector<2x512xf32>
    %69 = vector.extract_strided_slice %68 {offsets = [0, 0], sizes = [2, 8], strides = [1, 1]} : vector<2x512xf32> to vector<2x8xf32>
    %70 = arith.negf %69 : vector<2x8xf32>
    %71 = math.exp %70 : vector<2x8xf32>
    %cst_43 = arith.constant 1.000000e+00 : f32
    %72 = vector.broadcast %cst_43 : f32 to vector<2x8xf32>
    %73 = arith.addf %72, %71 : vector<2x8xf32>
    %74 = arith.divf %72, %73 : vector<2x8xf32>
    %75 = vector.extract_strided_slice %68 {offsets = [0, 128], sizes = [2, 8], strides = [1, 1]} : vector<2x512xf32> to vector<2x8xf32>
    %76 = arith.negf %75 : vector<2x8xf32>
    %77 = math.exp %76 : vector<2x8xf32>
    %cst_44 = arith.constant 1.000000e+00 : f32
    %78 = vector.broadcast %cst_44 : f32 to vector<2x8xf32>
    %79 = arith.addf %78, %77 : vector<2x8xf32>
    %80 = arith.divf %78, %79 : vector<2x8xf32>
    %81 = vector.extract_strided_slice %68 {offsets = [0, 256], sizes = [2, 8], strides = [1, 1]} : vector<2x512xf32> to vector<2x8xf32>
    %82 = math.tanh %81 : vector<2x8xf32>
    %83 = vector.extract_strided_slice %68 {offsets = [0, 384], sizes = [2, 8], strides = [1, 1]} : vector<2x512xf32> to vector<2x8xf32>
    %84 = arith.negf %83 : vector<2x8xf32>
    %85 = math.exp %84 : vector<2x8xf32>
    %cst_45 = arith.constant 1.000000e+00 : f32
    %86 = vector.broadcast %cst_45 : f32 to vector<2x8xf32>
    %87 = arith.addf %86, %85 : vector<2x8xf32>
    %88 = arith.divf %86, %87 : vector<2x8xf32>
    %89 = arith.mulf %80, %34 : vector<2x8xf32>
    %90 = arith.mulf %74, %82 : vector<2x8xf32>
    %91 = arith.addf %89, %90 : vector<2x8xf32>
    %92 = math.tanh %91 : vector<2x8xf32>
    %93 = arith.mulf %88, %92 : vector<2x8xf32>
    %cst_46 = arith.constant dense<0.000000e+00> : vector<2x512xf32>
    %94 = tpu.matmul %93, %25, %cst_46 {dimension_numbers = #tpu.dot_dimension_numbers<[1], [0], [0], [1], [0, 0, 1, 1], [], []>} : vector<2x8xf32>, vector<8x512xf32>, vector<2x512xf32> -> vector<2x512xf32>
    %95 = vector.broadcast %26 : vector<1x512xf32> to vector<2x512xf32>
    %96 = arith.addf %94, %95 : vector<2x512xf32>
    %c8_47 = arith.constant 8 : index
    %c0_48 = arith.constant 0 : index
    %97 = vector.load %arg8[%c8_47, %c0_48] : memref<64x512xf32, #tpu.memory_space<vmem>>, vector<2x512xf32>
    %98 = arith.addf %97, %66 : vector<2x512xf32>
    %99 = vector.extract_strided_slice %98 {offsets = [0, 0], sizes = [2, 8], strides = [1, 1]} : vector<2x512xf32> to vector<2x8xf32>
    %100 = arith.negf %99 : vector<2x8xf32>
    %101 = math.exp %100 : vector<2x8xf32>
    %cst_49 = arith.constant 1.000000e+00 : f32
    %102 = vector.broadcast %cst_49 : f32 to vector<2x8xf32>
    %103 = arith.addf %102, %101 : vector<2x8xf32>
    %104 = arith.divf %102, %103 : vector<2x8xf32>
    %105 = vector.extract_strided_slice %98 {offsets = [0, 128], sizes = [2, 8], strides = [1, 1]} : vector<2x512xf32> to vector<2x8xf32>
    %106 = arith.negf %105 : vector<2x8xf32>
    %107 = math.exp %106 : vector<2x8xf32>
    %cst_50 = arith.constant 1.000000e+00 : f32
    %108 = vector.broadcast %cst_50 : f32 to vector<2x8xf32>
    %109 = arith.addf %108, %107 : vector<2x8xf32>
    %110 = arith.divf %108, %109 : vector<2x8xf32>
    %111 = vector.extract_strided_slice %98 {offsets = [0, 256], sizes = [2, 8], strides = [1, 1]} : vector<2x512xf32> to vector<2x8xf32>
    %112 = math.tanh %111 : vector<2x8xf32>
    %113 = vector.extract_strided_slice %98 {offsets = [0, 384], sizes = [2, 8], strides = [1, 1]} : vector<2x512xf32> to vector<2x8xf32>
    %114 = arith.negf %113 : vector<2x8xf32>
    %115 = math.exp %114 : vector<2x8xf32>
    %cst_51 = arith.constant 1.000000e+00 : f32
    %116 = vector.broadcast %cst_51 : f32 to vector<2x8xf32>
    %117 = arith.addf %116, %115 : vector<2x8xf32>
    %118 = arith.divf %116, %117 : vector<2x8xf32>
    %119 = arith.mulf %110, %63 : vector<2x8xf32>
    %120 = arith.mulf %104, %112 : vector<2x8xf32>
    %121 = arith.addf %119, %120 : vector<2x8xf32>
    %122 = math.tanh %121 : vector<2x8xf32>
    %123 = arith.mulf %118, %122 : vector<2x8xf32>
    %cst_52 = arith.constant dense<0.000000e+00> : vector<2x512xf32>
    %124 = tpu.matmul %123, %23, %cst_52 {dimension_numbers = #tpu.dot_dimension_numbers<[1], [0], [0], [1], [0, 0, 1, 1], [], []>} : vector<2x8xf32>, vector<8x512xf32>, vector<2x512xf32> -> vector<2x512xf32>
    %cst_53 = arith.constant dense<0.000000e+00> : vector<2x512xf32>
    %125 = tpu.matmul %123, %24, %cst_53 {dimension_numbers = #tpu.dot_dimension_numbers<[1], [0], [0], [1], [0, 0, 1, 1], [], []>} : vector<2x8xf32>, vector<8x512xf32>, vector<2x512xf32> -> vector<2x512xf32>
    %126 = arith.addf %125, %96 : vector<2x512xf32>
    %127 = vector.extract_strided_slice %126 {offsets = [0, 0], sizes = [2, 8], strides = [1, 1]} : vector<2x512xf32> to vector<2x8xf32>
    %128 = arith.negf %127 : vector<2x8xf32>
    %129 = math.exp %128 : vector<2x8xf32>
    %cst_54 = arith.constant 1.000000e+00 : f32
    %130 = vector.broadcast %cst_54 : f32 to vector<2x8xf32>
    %131 = arith.addf %130, %129 : vector<2x8xf32>
    %132 = arith.divf %130, %131 : vector<2x8xf32>
    %133 = vector.extract_strided_slice %126 {offsets = [0, 128], sizes = [2, 8], strides = [1, 1]} : vector<2x512xf32> to vector<2x8xf32>
    %134 = arith.negf %133 : vector<2x8xf32>
    %135 = math.exp %134 : vector<2x8xf32>
    %cst_55 = arith.constant 1.000000e+00 : f32
    %136 = vector.broadcast %cst_55 : f32 to vector<2x8xf32>
    %137 = arith.addf %136, %135 : vector<2x8xf32>
    %138 = arith.divf %136, %137 : vector<2x8xf32>
    %139 = vector.extract_strided_slice %126 {offsets = [0, 256], sizes = [2, 8], strides = [1, 1]} : vector<2x512xf32> to vector<2x8xf32>
    %140 = math.tanh %139 : vector<2x8xf32>
    %141 = vector.extract_strided_slice %126 {offsets = [0, 384], sizes = [2, 8], strides = [1, 1]} : vector<2x512xf32> to vector<2x8xf32>
    %142 = arith.negf %141 : vector<2x8xf32>
    %143 = math.exp %142 : vector<2x8xf32>
    %cst_56 = arith.constant 1.000000e+00 : f32
    %144 = vector.broadcast %cst_56 : f32 to vector<2x8xf32>
    %145 = arith.addf %144, %143 : vector<2x8xf32>
    %146 = arith.divf %144, %145 : vector<2x8xf32>
    %147 = arith.mulf %138, %91 : vector<2x8xf32>
    %148 = arith.mulf %132, %140 : vector<2x8xf32>
    %149 = arith.addf %147, %148 : vector<2x8xf32>
    %150 = math.tanh %149 : vector<2x8xf32>
    %151 = arith.mulf %146, %150 : vector<2x8xf32>
    %cst_57 = arith.constant dense<0.000000e+00> : vector<2x512xf32>
    %152 = tpu.matmul %151, %25, %cst_57 {dimension_numbers = #tpu.dot_dimension_numbers<[1], [0], [0], [1], [0, 0, 1, 1], [], []>} : vector<2x8xf32>, vector<8x512xf32>, vector<2x512xf32> -> vector<2x512xf32>
    %153 = vector.broadcast %26 : vector<1x512xf32> to vector<2x512xf32>
    %154 = arith.addf %152, %153 : vector<2x512xf32>
    %c16_58 = arith.constant 16 : index
    %c0_59 = arith.constant 0 : index
    %155 = vector.load %arg8[%c16_58, %c0_59] : memref<64x512xf32, #tpu.memory_space<vmem>>, vector<2x512xf32>
    %156 = arith.addf %155, %124 : vector<2x512xf32>
    %157 = vector.extract_strided_slice %156 {offsets = [0, 0], sizes = [2, 8], strides = [1, 1]} : vector<2x512xf32> to vector<2x8xf32>
    %158 = arith.negf %157 : vector<2x8xf32>
    %159 = math.exp %158 : vector<2x8xf32>
    %cst_60 = arith.constant 1.000000e+00 : f32
    %160 = vector.broadcast %cst_60 : f32 to vector<2x8xf32>
    %161 = arith.addf %160, %159 : vector<2x8xf32>
    %162 = arith.divf %160, %161 : vector<2x8xf32>
    %163 = vector.extract_strided_slice %156 {offsets = [0, 128], sizes = [2, 8], strides = [1, 1]} : vector<2x512xf32> to vector<2x8xf32>
    %164 = arith.negf %163 : vector<2x8xf32>
    %165 = math.exp %164 : vector<2x8xf32>
    %cst_61 = arith.constant 1.000000e+00 : f32
    %166 = vector.broadcast %cst_61 : f32 to vector<2x8xf32>
    %167 = arith.addf %166, %165 : vector<2x8xf32>
    %168 = arith.divf %166, %167 : vector<2x8xf32>
    %169 = vector.extract_strided_slice %156 {offsets = [0, 256], sizes = [2, 8], strides = [1, 1]} : vector<2x512xf32> to vector<2x8xf32>
    %170 = math.tanh %169 : vector<2x8xf32>
    %171 = vector.extract_strided_slice %156 {offsets = [0, 384], sizes = [2, 8], strides = [1, 1]} : vector<2x512xf32> to vector<2x8xf32>
    %172 = arith.negf %171 : vector<2x8xf32>
    %173 = math.exp %172 : vector<2x8xf32>
    %cst_62 = arith.constant 1.000000e+00 : f32
    %174 = vector.broadcast %cst_62 : f32 to vector<2x8xf32>
    %175 = arith.addf %174, %173 : vector<2x8xf32>
    %176 = arith.divf %174, %175 : vector<2x8xf32>
    %177 = arith.mulf %168, %121 : vector<2x8xf32>
    %178 = arith.mulf %162, %170 : vector<2x8xf32>
    %179 = arith.addf %177, %178 : vector<2x8xf32>
    %180 = math.tanh %179 : vector<2x8xf32>
    %181 = arith.mulf %176, %180 : vector<2x8xf32>
    %cst_63 = arith.constant dense<0.000000e+00> : vector<2x512xf32>
    %182 = tpu.matmul %181, %23, %cst_63 {dimension_numbers = #tpu.dot_dimension_numbers<[1], [0], [0], [1], [0, 0, 1, 1], [], []>} : vector<2x8xf32>, vector<8x512xf32>, vector<2x512xf32> -> vector<2x512xf32>
    %cst_64 = arith.constant dense<0.000000e+00> : vector<2x512xf32>
    %183 = tpu.matmul %181, %24, %cst_64 {dimension_numbers = #tpu.dot_dimension_numbers<[1], [0], [0], [1], [0, 0, 1, 1], [], []>} : vector<2x8xf32>, vector<8x512xf32>, vector<2x512xf32> -> vector<2x512xf32>
    %184 = arith.addf %183, %154 : vector<2x512xf32>
    %185 = vector.extract_strided_slice %184 {offsets = [0, 0], sizes = [2, 8], strides = [1, 1]} : vector<2x512xf32> to vector<2x8xf32>
    %186 = arith.negf %185 : vector<2x8xf32>
    %187 = math.exp %186 : vector<2x8xf32>
    %cst_65 = arith.constant 1.000000e+00 : f32
    %188 = vector.broadcast %cst_65 : f32 to vector<2x8xf32>
    %189 = arith.addf %188, %187 : vector<2x8xf32>
    %190 = arith.divf %188, %189 : vector<2x8xf32>
    %191 = vector.extract_strided_slice %184 {offsets = [0, 128], sizes = [2, 8], strides = [1, 1]} : vector<2x512xf32> to vector<2x8xf32>
    %192 = arith.negf %191 : vector<2x8xf32>
    %193 = math.exp %192 : vector<2x8xf32>
    %cst_66 = arith.constant 1.000000e+00 : f32
    %194 = vector.broadcast %cst_66 : f32 to vector<2x8xf32>
    %195 = arith.addf %194, %193 : vector<2x8xf32>
    %196 = arith.divf %194, %195 : vector<2x8xf32>
    %197 = vector.extract_strided_slice %184 {offsets = [0, 256], sizes = [2, 8], strides = [1, 1]} : vector<2x512xf32> to vector<2x8xf32>
    %198 = math.tanh %197 : vector<2x8xf32>
    %199 = vector.extract_strided_slice %184 {offsets = [0, 384], sizes = [2, 8], strides = [1, 1]} : vector<2x512xf32> to vector<2x8xf32>
    %200 = arith.negf %199 : vector<2x8xf32>
    %201 = math.exp %200 : vector<2x8xf32>
    %cst_67 = arith.constant 1.000000e+00 : f32
    %202 = vector.broadcast %cst_67 : f32 to vector<2x8xf32>
    %203 = arith.addf %202, %201 : vector<2x8xf32>
    %204 = arith.divf %202, %203 : vector<2x8xf32>
    %205 = arith.mulf %196, %149 : vector<2x8xf32>
    %206 = arith.mulf %190, %198 : vector<2x8xf32>
    %207 = arith.addf %205, %206 : vector<2x8xf32>
    %208 = math.tanh %207 : vector<2x8xf32>
    %209 = arith.mulf %204, %208 : vector<2x8xf32>
    %cst_68 = arith.constant dense<0.000000e+00> : vector<2x512xf32>
    %210 = tpu.matmul %209, %25, %cst_68 {dimension_numbers = #tpu.dot_dimension_numbers<[1], [0], [0], [1], [0, 0, 1, 1], [], []>} : vector<2x8xf32>, vector<8x512xf32>, vector<2x512xf32> -> vector<2x512xf32>
    %211 = vector.broadcast %26 : vector<1x512xf32> to vector<2x512xf32>
    %212 = arith.addf %210, %211 : vector<2x512xf32>
    %c24_69 = arith.constant 24 : index
    %c0_70 = arith.constant 0 : index
    %213 = vector.load %arg8[%c24_69, %c0_70] : memref<64x512xf32, #tpu.memory_space<vmem>>, vector<2x512xf32>
    %214 = arith.addf %213, %182 : vector<2x512xf32>
    %215 = vector.extract_strided_slice %214 {offsets = [0, 0], sizes = [2, 8], strides = [1, 1]} : vector<2x512xf32> to vector<2x8xf32>
    %216 = arith.negf %215 : vector<2x8xf32>
    %217 = math.exp %216 : vector<2x8xf32>
    %cst_71 = arith.constant 1.000000e+00 : f32
    %218 = vector.broadcast %cst_71 : f32 to vector<2x8xf32>
    %219 = arith.addf %218, %217 : vector<2x8xf32>
    %220 = arith.divf %218, %219 : vector<2x8xf32>
    %221 = vector.extract_strided_slice %214 {offsets = [0, 128], sizes = [2, 8], strides = [1, 1]} : vector<2x512xf32> to vector<2x8xf32>
    %222 = arith.negf %221 : vector<2x8xf32>
    %223 = math.exp %222 : vector<2x8xf32>
    %cst_72 = arith.constant 1.000000e+00 : f32
    %224 = vector.broadcast %cst_72 : f32 to vector<2x8xf32>
    %225 = arith.addf %224, %223 : vector<2x8xf32>
    %226 = arith.divf %224, %225 : vector<2x8xf32>
    %227 = vector.extract_strided_slice %214 {offsets = [0, 256], sizes = [2, 8], strides = [1, 1]} : vector<2x512xf32> to vector<2x8xf32>
    %228 = math.tanh %227 : vector<2x8xf32>
    %229 = vector.extract_strided_slice %214 {offsets = [0, 384], sizes = [2, 8], strides = [1, 1]} : vector<2x512xf32> to vector<2x8xf32>
    %230 = arith.negf %229 : vector<2x8xf32>
    %231 = math.exp %230 : vector<2x8xf32>
    %cst_73 = arith.constant 1.000000e+00 : f32
    %232 = vector.broadcast %cst_73 : f32 to vector<2x8xf32>
    %233 = arith.addf %232, %231 : vector<2x8xf32>
    %234 = arith.divf %232, %233 : vector<2x8xf32>
    %235 = arith.mulf %226, %179 : vector<2x8xf32>
    %236 = arith.mulf %220, %228 : vector<2x8xf32>
    %237 = arith.addf %235, %236 : vector<2x8xf32>
    %238 = math.tanh %237 : vector<2x8xf32>
    %239 = arith.mulf %234, %238 : vector<2x8xf32>
    %cst_74 = arith.constant dense<0.000000e+00> : vector<2x512xf32>
    %240 = tpu.matmul %239, %23, %cst_74 {dimension_numbers = #tpu.dot_dimension_numbers<[1], [0], [0], [1], [0, 0, 1, 1], [], []>} : vector<2x8xf32>, vector<8x512xf32>, vector<2x512xf32> -> vector<2x512xf32>
    %cst_75 = arith.constant dense<0.000000e+00> : vector<2x512xf32>
    %241 = tpu.matmul %239, %24, %cst_75 {dimension_numbers = #tpu.dot_dimension_numbers<[1], [0], [0], [1], [0, 0, 1, 1], [], []>} : vector<2x8xf32>, vector<8x512xf32>, vector<2x512xf32> -> vector<2x512xf32>
    %242 = arith.addf %241, %212 : vector<2x512xf32>
    %243 = vector.extract_strided_slice %242 {offsets = [0, 0], sizes = [2, 8], strides = [1, 1]} : vector<2x512xf32> to vector<2x8xf32>
    %244 = arith.negf %243 : vector<2x8xf32>
    %245 = math.exp %244 : vector<2x8xf32>
    %cst_76 = arith.constant 1.000000e+00 : f32
    %246 = vector.broadcast %cst_76 : f32 to vector<2x8xf32>
    %247 = arith.addf %246, %245 : vector<2x8xf32>
    %248 = arith.divf %246, %247 : vector<2x8xf32>
    %249 = vector.extract_strided_slice %242 {offsets = [0, 128], sizes = [2, 8], strides = [1, 1]} : vector<2x512xf32> to vector<2x8xf32>
    %250 = arith.negf %249 : vector<2x8xf32>
    %251 = math.exp %250 : vector<2x8xf32>
    %cst_77 = arith.constant 1.000000e+00 : f32
    %252 = vector.broadcast %cst_77 : f32 to vector<2x8xf32>
    %253 = arith.addf %252, %251 : vector<2x8xf32>
    %254 = arith.divf %252, %253 : vector<2x8xf32>
    %255 = vector.extract_strided_slice %242 {offsets = [0, 256], sizes = [2, 8], strides = [1, 1]} : vector<2x512xf32> to vector<2x8xf32>
    %256 = math.tanh %255 : vector<2x8xf32>
    %257 = vector.extract_strided_slice %242 {offsets = [0, 384], sizes = [2, 8], strides = [1, 1]} : vector<2x512xf32> to vector<2x8xf32>
    %258 = arith.negf %257 : vector<2x8xf32>
    %259 = math.exp %258 : vector<2x8xf32>
    %cst_78 = arith.constant 1.000000e+00 : f32
    %260 = vector.broadcast %cst_78 : f32 to vector<2x8xf32>
    %261 = arith.addf %260, %259 : vector<2x8xf32>
    %262 = arith.divf %260, %261 : vector<2x8xf32>
    %263 = arith.mulf %254, %207 : vector<2x8xf32>
    %264 = arith.mulf %248, %256 : vector<2x8xf32>
    %265 = arith.addf %263, %264 : vector<2x8xf32>
    %266 = math.tanh %265 : vector<2x8xf32>
    %267 = arith.mulf %262, %266 : vector<2x8xf32>
    %cst_79 = arith.constant dense<0.000000e+00> : vector<2x512xf32>
    %268 = tpu.matmul %267, %25, %cst_79 {dimension_numbers = #tpu.dot_dimension_numbers<[1], [0], [0], [1], [0, 0, 1, 1], [], []>} : vector<2x8xf32>, vector<8x512xf32>, vector<2x512xf32> -> vector<2x512xf32>
    %269 = vector.broadcast %26 : vector<1x512xf32> to vector<2x512xf32>
    %270 = arith.addf %268, %269 : vector<2x512xf32>
    %c32_80 = arith.constant 32 : index
    %c0_81 = arith.constant 0 : index
    %271 = vector.load %arg8[%c32_80, %c0_81] : memref<64x512xf32, #tpu.memory_space<vmem>>, vector<2x512xf32>
    %272 = arith.addf %271, %240 : vector<2x512xf32>
    %273 = vector.extract_strided_slice %272 {offsets = [0, 0], sizes = [2, 8], strides = [1, 1]} : vector<2x512xf32> to vector<2x8xf32>
    %274 = arith.negf %273 : vector<2x8xf32>
    %275 = math.exp %274 : vector<2x8xf32>
    %cst_82 = arith.constant 1.000000e+00 : f32
    %276 = vector.broadcast %cst_82 : f32 to vector<2x8xf32>
    %277 = arith.addf %276, %275 : vector<2x8xf32>
    %278 = arith.divf %276, %277 : vector<2x8xf32>
    %279 = vector.extract_strided_slice %272 {offsets = [0, 128], sizes = [2, 8], strides = [1, 1]} : vector<2x512xf32> to vector<2x8xf32>
    %280 = arith.negf %279 : vector<2x8xf32>
    %281 = math.exp %280 : vector<2x8xf32>
    %cst_83 = arith.constant 1.000000e+00 : f32
    %282 = vector.broadcast %cst_83 : f32 to vector<2x8xf32>
    %283 = arith.addf %282, %281 : vector<2x8xf32>
    %284 = arith.divf %282, %283 : vector<2x8xf32>
    %285 = vector.extract_strided_slice %272 {offsets = [0, 256], sizes = [2, 8], strides = [1, 1]} : vector<2x512xf32> to vector<2x8xf32>
    %286 = math.tanh %285 : vector<2x8xf32>
    %287 = vector.extract_strided_slice %272 {offsets = [0, 384], sizes = [2, 8], strides = [1, 1]} : vector<2x512xf32> to vector<2x8xf32>
    %288 = arith.negf %287 : vector<2x8xf32>
    %289 = math.exp %288 : vector<2x8xf32>
    %cst_84 = arith.constant 1.000000e+00 : f32
    %290 = vector.broadcast %cst_84 : f32 to vector<2x8xf32>
    %291 = arith.addf %290, %289 : vector<2x8xf32>
    %292 = arith.divf %290, %291 : vector<2x8xf32>
    %293 = arith.mulf %284, %237 : vector<2x8xf32>
    %294 = arith.mulf %278, %286 : vector<2x8xf32>
    %295 = arith.addf %293, %294 : vector<2x8xf32>
    %296 = math.tanh %295 : vector<2x8xf32>
    %297 = arith.mulf %292, %296 : vector<2x8xf32>
    %cst_85 = arith.constant dense<0.000000e+00> : vector<2x512xf32>
    %298 = tpu.matmul %297, %23, %cst_85 {dimension_numbers = #tpu.dot_dimension_numbers<[1], [0], [0], [1], [0, 0, 1, 1], [], []>} : vector<2x8xf32>, vector<8x512xf32>, vector<2x512xf32> -> vector<2x512xf32>
    %cst_86 = arith.constant dense<0.000000e+00> : vector<2x512xf32>
    %299 = tpu.matmul %297, %24, %cst_86 {dimension_numbers = #tpu.dot_dimension_numbers<[1], [0], [0], [1], [0, 0, 1, 1], [], []>} : vector<2x8xf32>, vector<8x512xf32>, vector<2x512xf32> -> vector<2x512xf32>
    %300 = arith.addf %299, %270 : vector<2x512xf32>
    %301 = vector.extract_strided_slice %300 {offsets = [0, 0], sizes = [2, 8], strides = [1, 1]} : vector<2x512xf32> to vector<2x8xf32>
    %302 = arith.negf %301 : vector<2x8xf32>
    %303 = math.exp %302 : vector<2x8xf32>
    %cst_87 = arith.constant 1.000000e+00 : f32
    %304 = vector.broadcast %cst_87 : f32 to vector<2x8xf32>
    %305 = arith.addf %304, %303 : vector<2x8xf32>
    %306 = arith.divf %304, %305 : vector<2x8xf32>
    %307 = vector.extract_strided_slice %300 {offsets = [0, 128], sizes = [2, 8], strides = [1, 1]} : vector<2x512xf32> to vector<2x8xf32>
    %308 = arith.negf %307 : vector<2x8xf32>
    %309 = math.exp %308 : vector<2x8xf32>
    %cst_88 = arith.constant 1.000000e+00 : f32
    %310 = vector.broadcast %cst_88 : f32 to vector<2x8xf32>
    %311 = arith.addf %310, %309 : vector<2x8xf32>
    %312 = arith.divf %310, %311 : vector<2x8xf32>
    %313 = vector.extract_strided_slice %300 {offsets = [0, 256], sizes = [2, 8], strides = [1, 1]} : vector<2x512xf32> to vector<2x8xf32>
    %314 = math.tanh %313 : vector<2x8xf32>
    %315 = vector.extract_strided_slice %300 {offsets = [0, 384], sizes = [2, 8], strides = [1, 1]} : vector<2x512xf32> to vector<2x8xf32>
    %316 = arith.negf %315 : vector<2x8xf32>
    %317 = math.exp %316 : vector<2x8xf32>
    %cst_89 = arith.constant 1.000000e+00 : f32
    %318 = vector.broadcast %cst_89 : f32 to vector<2x8xf32>
    %319 = arith.addf %318, %317 : vector<2x8xf32>
    %320 = arith.divf %318, %319 : vector<2x8xf32>
    %321 = arith.mulf %312, %265 : vector<2x8xf32>
    %322 = arith.mulf %306, %314 : vector<2x8xf32>
    %323 = arith.addf %321, %322 : vector<2x8xf32>
    %324 = math.tanh %323 : vector<2x8xf32>
    %325 = arith.mulf %320, %324 : vector<2x8xf32>
    %cst_90 = arith.constant dense<0.000000e+00> : vector<2x512xf32>
    %326 = tpu.matmul %325, %25, %cst_90 {dimension_numbers = #tpu.dot_dimension_numbers<[1], [0], [0], [1], [0, 0, 1, 1], [], []>} : vector<2x8xf32>, vector<8x512xf32>, vector<2x512xf32> -> vector<2x512xf32>
    %327 = vector.broadcast %26 : vector<1x512xf32> to vector<2x512xf32>
    %328 = arith.addf %326, %327 : vector<2x512xf32>
    %c40 = arith.constant 40 : index
    %c0_91 = arith.constant 0 : index
    %329 = vector.load %arg8[%c40, %c0_91] : memref<64x512xf32, #tpu.memory_space<vmem>>, vector<2x512xf32>
    %330 = arith.addf %329, %298 : vector<2x512xf32>
    %331 = vector.extract_strided_slice %330 {offsets = [0, 0], sizes = [2, 8], strides = [1, 1]} : vector<2x512xf32> to vector<2x8xf32>
    %332 = arith.negf %331 : vector<2x8xf32>
    %333 = math.exp %332 : vector<2x8xf32>
    %cst_92 = arith.constant 1.000000e+00 : f32
    %334 = vector.broadcast %cst_92 : f32 to vector<2x8xf32>
    %335 = arith.addf %334, %333 : vector<2x8xf32>
    %336 = arith.divf %334, %335 : vector<2x8xf32>
    %337 = vector.extract_strided_slice %330 {offsets = [0, 128], sizes = [2, 8], strides = [1, 1]} : vector<2x512xf32> to vector<2x8xf32>
    %338 = arith.negf %337 : vector<2x8xf32>
    %339 = math.exp %338 : vector<2x8xf32>
    %cst_93 = arith.constant 1.000000e+00 : f32
    %340 = vector.broadcast %cst_93 : f32 to vector<2x8xf32>
    %341 = arith.addf %340, %339 : vector<2x8xf32>
    %342 = arith.divf %340, %341 : vector<2x8xf32>
    %343 = vector.extract_strided_slice %330 {offsets = [0, 256], sizes = [2, 8], strides = [1, 1]} : vector<2x512xf32> to vector<2x8xf32>
    %344 = math.tanh %343 : vector<2x8xf32>
    %345 = vector.extract_strided_slice %330 {offsets = [0, 384], sizes = [2, 8], strides = [1, 1]} : vector<2x512xf32> to vector<2x8xf32>
    %346 = arith.negf %345 : vector<2x8xf32>
    %347 = math.exp %346 : vector<2x8xf32>
    %cst_94 = arith.constant 1.000000e+00 : f32
    %348 = vector.broadcast %cst_94 : f32 to vector<2x8xf32>
    %349 = arith.addf %348, %347 : vector<2x8xf32>
    %350 = arith.divf %348, %349 : vector<2x8xf32>
    %351 = arith.mulf %342, %295 : vector<2x8xf32>
    %352 = arith.mulf %336, %344 : vector<2x8xf32>
    %353 = arith.addf %351, %352 : vector<2x8xf32>
    %354 = math.tanh %353 : vector<2x8xf32>
    %355 = arith.mulf %350, %354 : vector<2x8xf32>
    %cst_95 = arith.constant dense<0.000000e+00> : vector<2x512xf32>
    %356 = tpu.matmul %355, %23, %cst_95 {dimension_numbers = #tpu.dot_dimension_numbers<[1], [0], [0], [1], [0, 0, 1, 1], [], []>} : vector<2x8xf32>, vector<8x512xf32>, vector<2x512xf32> -> vector<2x512xf32>
    %cst_96 = arith.constant dense<0.000000e+00> : vector<2x512xf32>
    %357 = tpu.matmul %355, %24, %cst_96 {dimension_numbers = #tpu.dot_dimension_numbers<[1], [0], [0], [1], [0, 0, 1, 1], [], []>} : vector<2x8xf32>, vector<8x512xf32>, vector<2x512xf32> -> vector<2x512xf32>
    %358 = arith.addf %357, %328 : vector<2x512xf32>
    %359 = vector.extract_strided_slice %358 {offsets = [0, 0], sizes = [2, 8], strides = [1, 1]} : vector<2x512xf32> to vector<2x8xf32>
    %360 = arith.negf %359 : vector<2x8xf32>
    %361 = math.exp %360 : vector<2x8xf32>
    %cst_97 = arith.constant 1.000000e+00 : f32
    %362 = vector.broadcast %cst_97 : f32 to vector<2x8xf32>
    %363 = arith.addf %362, %361 : vector<2x8xf32>
    %364 = arith.divf %362, %363 : vector<2x8xf32>
    %365 = vector.extract_strided_slice %358 {offsets = [0, 128], sizes = [2, 8], strides = [1, 1]} : vector<2x512xf32> to vector<2x8xf32>
    %366 = arith.negf %365 : vector<2x8xf32>
    %367 = math.exp %366 : vector<2x8xf32>
    %cst_98 = arith.constant 1.000000e+00 : f32
    %368 = vector.broadcast %cst_98 : f32 to vector<2x8xf32>
    %369 = arith.addf %368, %367 : vector<2x8xf32>
    %370 = arith.divf %368, %369 : vector<2x8xf32>
    %371 = vector.extract_strided_slice %358 {offsets = [0, 256], sizes = [2, 8], strides = [1, 1]} : vector<2x512xf32> to vector<2x8xf32>
    %372 = math.tanh %371 : vector<2x8xf32>
    %373 = vector.extract_strided_slice %358 {offsets = [0, 384], sizes = [2, 8], strides = [1, 1]} : vector<2x512xf32> to vector<2x8xf32>
    %374 = arith.negf %373 : vector<2x8xf32>
    %375 = math.exp %374 : vector<2x8xf32>
    %cst_99 = arith.constant 1.000000e+00 : f32
    %376 = vector.broadcast %cst_99 : f32 to vector<2x8xf32>
    %377 = arith.addf %376, %375 : vector<2x8xf32>
    %378 = arith.divf %376, %377 : vector<2x8xf32>
    %379 = arith.mulf %370, %323 : vector<2x8xf32>
    %380 = arith.mulf %364, %372 : vector<2x8xf32>
    %381 = arith.addf %379, %380 : vector<2x8xf32>
    %382 = math.tanh %381 : vector<2x8xf32>
    %383 = arith.mulf %378, %382 : vector<2x8xf32>
    %cst_100 = arith.constant dense<0.000000e+00> : vector<2x512xf32>
    %384 = tpu.matmul %383, %25, %cst_100 {dimension_numbers = #tpu.dot_dimension_numbers<[1], [0], [0], [1], [0, 0, 1, 1], [], []>} : vector<2x8xf32>, vector<8x512xf32>, vector<2x512xf32> -> vector<2x512xf32>
    %385 = vector.broadcast %26 : vector<1x512xf32> to vector<2x512xf32>
    %386 = arith.addf %384, %385 : vector<2x512xf32>
    %c48 = arith.constant 48 : index
    %c0_101 = arith.constant 0 : index
    %387 = vector.load %arg8[%c48, %c0_101] : memref<64x512xf32, #tpu.memory_space<vmem>>, vector<2x512xf32>
    %388 = arith.addf %387, %356 : vector<2x512xf32>
    %389 = vector.extract_strided_slice %388 {offsets = [0, 0], sizes = [2, 8], strides = [1, 1]} : vector<2x512xf32> to vector<2x8xf32>
    %390 = arith.negf %389 : vector<2x8xf32>
    %391 = math.exp %390 : vector<2x8xf32>
    %cst_102 = arith.constant 1.000000e+00 : f32
    %392 = vector.broadcast %cst_102 : f32 to vector<2x8xf32>
    %393 = arith.addf %392, %391 : vector<2x8xf32>
    %394 = arith.divf %392, %393 : vector<2x8xf32>
    %395 = vector.extract_strided_slice %388 {offsets = [0, 128], sizes = [2, 8], strides = [1, 1]} : vector<2x512xf32> to vector<2x8xf32>
    %396 = arith.negf %395 : vector<2x8xf32>
    %397 = math.exp %396 : vector<2x8xf32>
    %cst_103 = arith.constant 1.000000e+00 : f32
    %398 = vector.broadcast %cst_103 : f32 to vector<2x8xf32>
    %399 = arith.addf %398, %397 : vector<2x8xf32>
    %400 = arith.divf %398, %399 : vector<2x8xf32>
    %401 = vector.extract_strided_slice %388 {offsets = [0, 256], sizes = [2, 8], strides = [1, 1]} : vector<2x512xf32> to vector<2x8xf32>
    %402 = math.tanh %401 : vector<2x8xf32>
    %403 = vector.extract_strided_slice %388 {offsets = [0, 384], sizes = [2, 8], strides = [1, 1]} : vector<2x512xf32> to vector<2x8xf32>
    %404 = arith.negf %403 : vector<2x8xf32>
    %405 = math.exp %404 : vector<2x8xf32>
    %cst_104 = arith.constant 1.000000e+00 : f32
    %406 = vector.broadcast %cst_104 : f32 to vector<2x8xf32>
    %407 = arith.addf %406, %405 : vector<2x8xf32>
    %408 = arith.divf %406, %407 : vector<2x8xf32>
    %409 = arith.mulf %400, %353 : vector<2x8xf32>
    %410 = arith.mulf %394, %402 : vector<2x8xf32>
    %411 = arith.addf %409, %410 : vector<2x8xf32>
    %412 = math.tanh %411 : vector<2x8xf32>
    %413 = arith.mulf %408, %412 : vector<2x8xf32>
    %cst_105 = arith.constant dense<0.000000e+00> : vector<2x512xf32>
    %414 = tpu.matmul %413, %23, %cst_105 {dimension_numbers = #tpu.dot_dimension_numbers<[1], [0], [0], [1], [0, 0, 1, 1], [], []>} : vector<2x8xf32>, vector<8x512xf32>, vector<2x512xf32> -> vector<2x512xf32>
    %cst_106 = arith.constant dense<0.000000e+00> : vector<2x512xf32>
    %415 = tpu.matmul %413, %24, %cst_106 {dimension_numbers = #tpu.dot_dimension_numbers<[1], [0], [0], [1], [0, 0, 1, 1], [], []>} : vector<2x8xf32>, vector<8x512xf32>, vector<2x512xf32> -> vector<2x512xf32>
    %416 = arith.addf %415, %386 : vector<2x512xf32>
    %417 = vector.extract_strided_slice %416 {offsets = [0, 0], sizes = [2, 8], strides = [1, 1]} : vector<2x512xf32> to vector<2x8xf32>
    %418 = arith.negf %417 : vector<2x8xf32>
    %419 = math.exp %418 : vector<2x8xf32>
    %cst_107 = arith.constant 1.000000e+00 : f32
    %420 = vector.broadcast %cst_107 : f32 to vector<2x8xf32>
    %421 = arith.addf %420, %419 : vector<2x8xf32>
    %422 = arith.divf %420, %421 : vector<2x8xf32>
    %423 = vector.extract_strided_slice %416 {offsets = [0, 128], sizes = [2, 8], strides = [1, 1]} : vector<2x512xf32> to vector<2x8xf32>
    %424 = arith.negf %423 : vector<2x8xf32>
    %425 = math.exp %424 : vector<2x8xf32>
    %cst_108 = arith.constant 1.000000e+00 : f32
    %426 = vector.broadcast %cst_108 : f32 to vector<2x8xf32>
    %427 = arith.addf %426, %425 : vector<2x8xf32>
    %428 = arith.divf %426, %427 : vector<2x8xf32>
    %429 = vector.extract_strided_slice %416 {offsets = [0, 256], sizes = [2, 8], strides = [1, 1]} : vector<2x512xf32> to vector<2x8xf32>
    %430 = math.tanh %429 : vector<2x8xf32>
    %431 = vector.extract_strided_slice %416 {offsets = [0, 384], sizes = [2, 8], strides = [1, 1]} : vector<2x512xf32> to vector<2x8xf32>
    %432 = arith.negf %431 : vector<2x8xf32>
    %433 = math.exp %432 : vector<2x8xf32>
    %cst_109 = arith.constant 1.000000e+00 : f32
    %434 = vector.broadcast %cst_109 : f32 to vector<2x8xf32>
    %435 = arith.addf %434, %433 : vector<2x8xf32>
    %436 = arith.divf %434, %435 : vector<2x8xf32>
    %437 = arith.mulf %428, %381 : vector<2x8xf32>
    %438 = arith.mulf %422, %430 : vector<2x8xf32>
    %439 = arith.addf %437, %438 : vector<2x8xf32>
    %440 = math.tanh %439 : vector<2x8xf32>
    %441 = arith.mulf %436, %440 : vector<2x8xf32>
    %cst_110 = arith.constant dense<0.000000e+00> : vector<2x512xf32>
    %442 = tpu.matmul %441, %25, %cst_110 {dimension_numbers = #tpu.dot_dimension_numbers<[1], [0], [0], [1], [0, 0, 1, 1], [], []>} : vector<2x8xf32>, vector<8x512xf32>, vector<2x512xf32> -> vector<2x512xf32>
    %443 = vector.broadcast %26 : vector<1x512xf32> to vector<2x512xf32>
    %444 = arith.addf %442, %443 : vector<2x512xf32>
    %c56 = arith.constant 56 : index
    %c0_111 = arith.constant 0 : index
    %445 = vector.load %arg8[%c56, %c0_111] : memref<64x512xf32, #tpu.memory_space<vmem>>, vector<2x512xf32>
    %446 = arith.addf %445, %414 : vector<2x512xf32>
    %447 = vector.extract_strided_slice %446 {offsets = [0, 0], sizes = [2, 8], strides = [1, 1]} : vector<2x512xf32> to vector<2x8xf32>
    %448 = arith.negf %447 : vector<2x8xf32>
    %449 = math.exp %448 : vector<2x8xf32>
    %cst_112 = arith.constant 1.000000e+00 : f32
    %450 = vector.broadcast %cst_112 : f32 to vector<2x8xf32>
    %451 = arith.addf %450, %449 : vector<2x8xf32>
    %452 = arith.divf %450, %451 : vector<2x8xf32>
    %453 = vector.extract_strided_slice %446 {offsets = [0, 128], sizes = [2, 8], strides = [1, 1]} : vector<2x512xf32> to vector<2x8xf32>
    %454 = arith.negf %453 : vector<2x8xf32>
    %455 = math.exp %454 : vector<2x8xf32>
    %cst_113 = arith.constant 1.000000e+00 : f32
    %456 = vector.broadcast %cst_113 : f32 to vector<2x8xf32>
    %457 = arith.addf %456, %455 : vector<2x8xf32>
    %458 = arith.divf %456, %457 : vector<2x8xf32>
    %459 = vector.extract_strided_slice %446 {offsets = [0, 256], sizes = [2, 8], strides = [1, 1]} : vector<2x512xf32> to vector<2x8xf32>
    %460 = math.tanh %459 : vector<2x8xf32>
    %461 = vector.extract_strided_slice %446 {offsets = [0, 384], sizes = [2, 8], strides = [1, 1]} : vector<2x512xf32> to vector<2x8xf32>
    %462 = arith.negf %461 : vector<2x8xf32>
    %463 = math.exp %462 : vector<2x8xf32>
    %cst_114 = arith.constant 1.000000e+00 : f32
    %464 = vector.broadcast %cst_114 : f32 to vector<2x8xf32>
    %465 = arith.addf %464, %463 : vector<2x8xf32>
    %466 = arith.divf %464, %465 : vector<2x8xf32>
    %467 = arith.mulf %458, %411 : vector<2x8xf32>
    %468 = arith.mulf %452, %460 : vector<2x8xf32>
    %469 = arith.addf %467, %468 : vector<2x8xf32>
    %470 = math.tanh %469 : vector<2x8xf32>
    %471 = arith.mulf %466, %470 : vector<2x8xf32>
    %cst_115 = arith.constant dense<0.000000e+00> : vector<2x512xf32>
    %472 = tpu.matmul %471, %24, %cst_115 {dimension_numbers = #tpu.dot_dimension_numbers<[1], [0], [0], [1], [0, 0, 1, 1], [], []>} : vector<2x8xf32>, vector<8x512xf32>, vector<2x512xf32> -> vector<2x512xf32>
    %473 = arith.addf %472, %444 : vector<2x512xf32>
    %474 = vector.extract_strided_slice %473 {offsets = [0, 0], sizes = [2, 8], strides = [1, 1]} : vector<2x512xf32> to vector<2x8xf32>
    %475 = arith.negf %474 : vector<2x8xf32>
    %476 = math.exp %475 : vector<2x8xf32>
    %cst_116 = arith.constant 1.000000e+00 : f32
    %477 = vector.broadcast %cst_116 : f32 to vector<2x8xf32>
    %478 = arith.addf %477, %476 : vector<2x8xf32>
    %479 = arith.divf %477, %478 : vector<2x8xf32>
    %480 = vector.extract_strided_slice %473 {offsets = [0, 128], sizes = [2, 8], strides = [1, 1]} : vector<2x512xf32> to vector<2x8xf32>
    %481 = arith.negf %480 : vector<2x8xf32>
    %482 = math.exp %481 : vector<2x8xf32>
    %cst_117 = arith.constant 1.000000e+00 : f32
    %483 = vector.broadcast %cst_117 : f32 to vector<2x8xf32>
    %484 = arith.addf %483, %482 : vector<2x8xf32>
    %485 = arith.divf %483, %484 : vector<2x8xf32>
    %486 = vector.extract_strided_slice %473 {offsets = [0, 256], sizes = [2, 8], strides = [1, 1]} : vector<2x512xf32> to vector<2x8xf32>
    %487 = math.tanh %486 : vector<2x8xf32>
    %488 = vector.extract_strided_slice %473 {offsets = [0, 384], sizes = [2, 8], strides = [1, 1]} : vector<2x512xf32> to vector<2x8xf32>
    %489 = arith.negf %488 : vector<2x8xf32>
    %490 = math.exp %489 : vector<2x8xf32>
    %cst_118 = arith.constant 1.000000e+00 : f32
    %491 = vector.broadcast %cst_118 : f32 to vector<2x8xf32>
    %492 = arith.addf %491, %490 : vector<2x8xf32>
    %493 = arith.divf %491, %492 : vector<2x8xf32>
    %494 = arith.mulf %485, %439 : vector<2x8xf32>
    %495 = arith.mulf %479, %487 : vector<2x8xf32>
    %496 = arith.addf %494, %495 : vector<2x8xf32>
    %497 = math.tanh %496 : vector<2x8xf32>
    %498 = arith.mulf %493, %497 : vector<2x8xf32>
    %c0_119 = arith.constant 0 : index
    %c0_120 = arith.constant 0 : index
    %c0_121 = arith.constant 0 : index
    %c0_122 = arith.constant 0 : index
    %499 = vector.load %arg7[%c0_119, %c0_120, %c0_121, %c0_122] : memref<2x2x2x8xf32, #tpu.memory_space<vmem>>, vector<1x1x2x8xf32>
    %500 = vector.shape_cast %499 : vector<1x1x2x8xf32> to vector<2x8xf32>
    %501 = vector.shape_cast %471 : vector<2x8xf32> to vector<1x1x2x8xf32>
    tpu.vector_store %arg7[%c0_119, %c0_120, %c0_121, %c0_122], %501 {strides = array<i32>} : memref<2x2x2x8xf32, #tpu.memory_space<vmem>>, vector<1x1x2x8xf32>,
    %c0_123 = arith.constant 0 : index
    %c1_124 = arith.constant 1 : index
    %c0_125 = arith.constant 0 : index
    %c0_126 = arith.constant 0 : index
    %502 = vector.load %arg7[%c0_123, %c1_124, %c0_125, %c0_126] : memref<2x2x2x8xf32, #tpu.memory_space<vmem>>, vector<1x1x2x8xf32>
    %503 = vector.shape_cast %502 : vector<1x1x2x8xf32> to vector<2x8xf32>
    %504 = vector.shape_cast %498 : vector<2x8xf32> to vector<1x1x2x8xf32>
    tpu.vector_store %arg7[%c0_123, %c1_124, %c0_125, %c0_126], %504 {strides = array<i32>} : memref<2x2x2x8xf32, #tpu.memory_space<vmem>>, vector<1x1x2x8xf32>,
    %c1_127 = arith.constant 1 : index
    %c0_128 = arith.constant 0 : index
    %c0_129 = arith.constant 0 : index
    %c0_130 = arith.constant 0 : index
    %505 = vector.load %arg7[%c1_127, %c0_128, %c0_129, %c0_130] : memref<2x2x2x8xf32, #tpu.memory_space<vmem>>, vector<1x1x2x8xf32>
    %506 = vector.shape_cast %505 : vector<1x1x2x8xf32> to vector<2x8xf32>
    %507 = vector.shape_cast %469 : vector<2x8xf32> to vector<1x1x2x8xf32>
    tpu.vector_store %arg7[%c1_127, %c0_128, %c0_129, %c0_130], %507 {strides = array<i32>} : memref<2x2x2x8xf32, #tpu.memory_space<vmem>>, vector<1x1x2x8xf32>,
    %c1_131 = arith.constant 1 : index
    %c1_132 = arith.constant 1 : index
    %c0_133 = arith.constant 0 : index
    %c0_134 = arith.constant 0 : index
    %508 = vector.load %arg7[%c1_131, %c1_132, %c0_133, %c0_134] : memref<2x2x2x8xf32, #tpu.memory_space<vmem>>, vector<1x1x2x8xf32>
    %509 = vector.shape_cast %508 : vector<1x1x2x8xf32> to vector<2x8xf32>
    %510 = vector.shape_cast %496 : vector<2x8xf32> to vector<1x1x2x8xf32>
    tpu.vector_store %arg7[%c1_131, %c1_132, %c0_133, %c0_134], %510 {strides = array<i32>} : memref<2x2x2x8xf32, #tpu.memory_space<vmem>>, vector<1x1x2x8xf32>,
    %511 = arith.addf %471, %498 : vector<2x8xf32>
    %cst_135 = arith.constant 5.000000e-01 : f32
    %512 = vector.broadcast %cst_135 : f32 to vector<2x8xf32>
    %513 = arith.mulf %511, %512 : vector<2x8xf32>
    %c0_136 = arith.constant 0 : index
    %c0_137 = arith.constant 0 : index
    %514 = vector.load %arg5[%c0_136, %c0_137] : memref<74x128xf32, #tpu.memory_space<vmem>>, vector<8x64xf32>
    %c8_138 = arith.constant 8 : index
    %c0_139 = arith.constant 0 : index
    %515 = vector.load %arg5[%c8_138, %c0_139] : memref<74x128xf32, #tpu.memory_space<vmem>>, vector<64x128xf32>
    %c72 = arith.constant 72 : index
    %c0_140 = arith.constant 0 : index
    %516 = vector.load %arg5[%c72, %c0_140] : memref<74x128xf32, #tpu.memory_space<vmem>>, vector<1x64xf32>
    %c73 = arith.constant 73 : index
    %c0_141 = arith.constant 0 : index
    %517 = vector.load %arg5[%c73, %c0_141] : memref<74x128xf32, #tpu.memory_space<vmem>>, vector<1x128xf32>
    %cst_142 = arith.constant dense<0.000000e+00> : vector<2x64xf32>
    %518 = tpu.matmul %513, %514, %cst_142 {dimension_numbers = #tpu.dot_dimension_numbers<[1], [0], [0], [1], [0, 0, 1, 1], [], []>} : vector<2x8xf32>, vector<8x64xf32>, vector<2x64xf32> -> vector<2x64xf32>
    %519 = vector.broadcast %516 : vector<1x64xf32> to vector<2x64xf32>
    %520 = arith.addf %518, %519 : vector<2x64xf32>
    %cst_143 = arith.constant dense<0.000000e+00> : vector<2x128xf32>
    %521 = tpu.matmul %520, %515, %cst_143 {dimension_numbers = #tpu.dot_dimension_numbers<[1], [0], [0], [1], [0, 0, 1, 1], [], []>} : vector<2x64xf32>, vector<64x128xf32>, vector<2x128xf32> -> vector<2x128xf32>
    %522 = vector.broadcast %517 : vector<1x128xf32> to vector<2x128xf32>
    %523 = arith.addf %521, %522 : vector<2x128xf32>
    %c0_144 = arith.constant 0 : index
    %c0_145 = arith.constant 0 : index
    %524 = vector.load %arg6[%c0_144, %c0_145] : memref<2x128xf32, #tpu.memory_space<vmem>>, vector<2x128xf32>
    tpu.vector_store %arg6[%c0_144, %c0_145], %523 {strides = array<i32>} : memref<2x128xf32, #tpu.memory_space<vmem>>, vector<2x128xf32>,
    return
  }
}

</mosaic_0001>

<bundles_post_ra>
// kernel: prediction_network_forward.1
= control target key start
LH: loop header
LB: loop body
LE: loop exit
PB: predicated region body
PF: predicated region fallthrough
CT: control target
= control target key end

     0   :  { %13 = vsyncpa [#allocation4], 0  ;;  %s5922_s0 = inlined_call_operand.vmem [shape: f32[64,20], index: 0, kind: input, shape index: {}]   ;;  %s5923_s1 = inlined_call_operand.vmem [shape: f32[20,32], index: 1, kind: input, shape index: {}]   ;;  %s5924_s2 = inlined_call_operand.vmem [shape: f32[2,2,2,8], index: 2, kind: input, shape index: {}]   ;;  %s5925_s3 = inlined_call_operand.hbm [shape: f32[33,512], index: 3, kind: input, shape index: {}]   ;;  %s5926_s4 = inlined_call_operand.hbm [shape: f32[25,512], index: 4, kind: input, shape index: {}]   ;;  %s5927_s5 = inlined_call_operand.vmem [shape: f32[74,128], index: 5, kind: input, shape index: {}]   ;;  %s5928_s6 = inlined_call_operand.hbm [shape: f32[2,128], index: 6, kind: output, shape index: {0}]   ;;  %s5929_s7 = inlined_call_operand.vmem [shape: f32[2,2,2,8], index: 7, kind: output, shape index: {1}]  }
   0x1   :  { %14 = vsyncpa [#allocation7], 0 }
   0x2   :  { %15 = vsyncpa [#allocation5], 0  ;;  %s5303_s24 = smov [#allocation3]  }
   0x3   :  { %s27_s25 = sshll.u32 %s5303_s24, 4  ;;  %s28_s25 = int_to_ptr.vmem [resolvable:$true] %s27_s25 }
   0x4   :  { %s5245_s26 = scalar_lea.vmem %s28_s25, 2560  ;;  %p5250_p1 = scmp.lt.s32.totalorder %s28_s25, %s28_s25 }
   0x5   :  { %p5246_p0 = scmp.ne.s32.totalorder %s28_s25, %s5245_s26  ;;  %p5251_p2 = scmp.lt.s32.totalorder %s5245_s26, %s5245_s26 }
   0x7   :  { %p5252_p3 = por %p5251_p2, %p5250_p1 }
   0x9   :  { %p5253_p4 = pnand %p5252_p3, %p5246_p0 }
   0xb   :  { %5256 = shalt.err (!%p5253_p4)
}
   0xc   :  { %s5304_s27 = smov 512   ;;  %s5305_s28 = smov 32  }
   0xd   :  { %33 = dma.hbm_to_vmem [thread:$0]  %s5925_s3, 2560, %s28_s25, [#allocation4], %s5304_s27, %s5304_s27, %s5305_s28  }
   0xe   :  { %s5306_s8 = smov [#allocation6]  }
   0xf   :  { %s39_s9 = sshll.u32 %s5306_s8, 4  ;;  %s40_s9 = int_to_ptr.vmem [resolvable:$true] %s39_s9 }
  0x10   :  { %s5265_s10 = scalar_lea.vmem %s40_s9, 2048  ;;  %p5270_p6 = scmp.lt.s32.totalorder %s40_s9, %s40_s9 }
  0x11   :  { %p5266_p5 = scmp.ne.s32.totalorder %s40_s9, %s5265_s10  ;;  %p5271_p7 = scmp.lt.s32.totalorder %s5265_s10, %s5265_s10 }
  0x13   :  { %p5272_p8 = por %p5271_p7, %p5270_p6 }
  0x15   :  { %p5273_p9 = pnand %p5272_p8, %p5266_p5 }
  0x17   :  { %5276 = shalt.err (!%p5273_p9)
}
  0x18   :  { %45 = dma.hbm_to_vmem [thread:$0]  %s5926_s4, 2048, %s40_s9, [#allocation7], %s5304_s27, %s5304_s27, %s5305_s28  }
  0x19   :  { %5297 = dma.done.wait [#allocation4], 2560  }
  0x1a   :  { %5298 = vsyncadd [#allocation4], 4294964736 }
  0x1b   :  { %5299 = dma.done.wait [#allocation7], 2048  }
  0x1c   :  { %5300 = vsyncadd [#allocation7], 4294965248  ;;  %v5359_v0 = vld [vmem:[%s5923_s1 + $0x10] sm:$0xf]  ;;  %vm67_vm0 = vcmask 257024   ;;  %v5364_v1 = vld [vmem:[%s5923_s1] sm:$0xff]  ;;  %v129_v59 = vlaneseq }
  0x1d   :  { %vm60_vm1 = vcmask 261120   ;;  %v5369_v2 = vld [vmem:[%s5923_s1 + $0x8] sm:$0xff]  ;;  %v59_v3 = vmul.f32 %v5359_v0, %v5359_v0  ;;  %v57_v4 = vmul.f32 %v5364_v1, %v5364_v1  ;;  %v119_v10 = vld [vmem:[#allocation3 + $0x60] sm:$0xff]  ;;  %v122_v13 = vld [vmem:[#allocation3 + $0x78] sm:$0xff]  ;;  %v5307_v14 = vmov 0.0   ;;  %s5309_s15 = smov [#allocation8]  }
  0x1e   :  { %v58_v5 = vmul.f32 %v5369_v2, %v5369_v2  ;;  %v120_v9 = vld [vmem:[#allocation3 + $0x68] sm:$0xff]  ;;  %v115_v12 = vld [vmem:[#allocation3 + $0x40] sm:$0xff]  ;;  %222 = vmatprep.mubr.f32.mxu0 %v5307_v14  ;;  %4942 = vmatprep.subr.mxu1 %v122_v13  ;;  %v5380_v16 = vld [vmem:[#allocation3 + $0x70] sm:$0xff]  ;;  %v5424_v61 = vshrl.u32 %v129_v59, 7  ;;  %vm357_vm11 = vcmask 1043456   ;;  %vm332_vm12 = vcmask 162816  }
  0x1f   :  { %v68_v6 = vsel %vm67_vm0, %v59_v3, 0.0  ;;  %v61_v7 = vsel %vm60_vm1, %v57_v4, 0.0  ;;  %v116_v11 = vld [vmem:[#allocation3 + $0x48] sm:$0xff]  ;;  %182 = vmatprep.subr.mxu0 %v120_v9  ;;  %v111_v17 = vld [vmem:[#allocation3 + $0x20] sm:$0xff]  ;;  %4946 = vmatpush1.msra.mxu1 %v5380_v16  ;;  %v5383_v18 = vld [vmem:[#allocation3 + $0x58] sm:$0xff]  ;;  %vm649_vm13 = vcmask 64512  }
  0x20   :  { %69 = vadd.xlane.f32.xlu1 %v68_v6  ;;  %62 = vadd.xlane.f32.xlu0 %v61_v7  ;;  %v64_v8 = vsel %vm60_vm1, %v58_v5, 0.0  ;;  %v112_v15 = vld [vmem:[#allocation3 + $0x28] sm:$0xff]  ;;  %v5385_v19 = vld [vmem:[#allocation3 + $0x50] sm:$0xff]  ;;  %v107_v21 = vld [vmem:[#allocation3] sm:$0xff]  ;;  %v139_v3 = vsub.s32 2, %v5424_v61  ;;  %v131_v5 = vsub.s32 0, %v5424_v61 }
  0x21   :  { %183 = vmatpush1.msra.mxu0 %v119_v10  ;;  %v108_v20 = vld [vmem:[#allocation3 + $0x8] sm:$0xff]  ;;  %4943 = vmatprep.subr.mxu1 %v5383_v18  ;;  %v5390_v22 = vld [vmem:[#allocation3 + $0x38] sm:$0xff]  ;;  %v5393_v23 = vld [vmem:[#allocation3 + $0x30] sm:$0xff]  ;;  %vm4578_vm14 = vcmask 58368   ;;  %vm5308_vm15 = vmmov 0   ;;  %vm4680_vm0 = vcmask 523264  }
  0x22   :  { %184 = vmatprep.subr.mxu0 %v116_v11  ;;  %4947 = vmatpush1.msra.mxu1 %v5385_v19  ;;  %v5395_v24 = vld [vmem:[#allocation3 + $0x18] sm:$0xff]  ;;  %v5398_v25 = vld [vmem:[#allocation3 + $0x10] sm:$0xff]  ;;  %s4761_s16 = sshll.u32 %s5309_s15, 4  ;;  %s4762_s16 = int_to_ptr.vmem [resolvable:$true] %s4761_s16 }
  0x23   :  { %185 = vmatpush1.msra.mxu0 %v115_v12  ;;  %311 = vmatprep.mubr.f32.mxu1 %v5307_v14  ;;  %v124_v7 = vld [vmem:[#allocation3 + $0x80] ss:$8 sm:$0xf]  ;;  %s5277_s17 = scalar_lea.vmem %s4762_s16, 32  ;;  %p5282_p11 = scmp.lt.s32.totalorder %s4762_s16, %s4762_s16 }
  0x24   :  { %65 = vadd.xlane.f32.xlu0 %v64_v8  ;;  %186 = vmatprep.subr.mxu0 %v112_v15  ;;  %v140_v12 = vrot.slane %v124_v7, %v139_v3  ;;  %v132_v15 = vrot.slane %v124_v7, %v131_v5  ;;  %p5278_p10 = scmp.ne.s32.totalorder %s4762_s16, %s5277_s17  ;;  %p5283_p12 = scmp.lt.s32.totalorder %s5277_s17, %s5277_s17 }
  0x25   :  { %187 = vmatpush1.msra.mxu0 %v111_v17  ;;  %4944 = vmatprep.subr.mxu1 %v5390_v22 }
  0x26   :  { %188 = vmatprep.subr.mxu0 %v108_v20  ;;  %4948 = vmatpush1.msra.mxu1 %v5393_v23  ;;  %p5284_p13 = por %p5283_p12, %p5282_p11 }
  0x27   :  { %189 = vmatpush1.msra.mxu0 %v107_v21  ;;  %4945 = vmatprep.subr.mxu1 %v5395_v24 }
  0x28   :  { %265 = vmatprep.subr.mxu0 %v122_v13  ;;  %4949 = vmatpush1.msra.mxu1 %v5398_v25  ;;  %p5285_p0 = pnand %p5284_p13, %p5278_p10 }
  0xa9   :  { %v70_v26 = vpop.xlane.xlu1 %69  ;;  %v63_v27 = vpop.xlane.xlu0 %62 }
  0xaa   :  { %4957 = vrsqrt.f32 %v70_v26  ;;  %vm87_vm2 = vcmp.eq.f32.partialorder %v70_v26, inf  ;;  %v90_v32 = vand.u32 2147483648, %v70_v26  ;;  %vm89_vm3 = vcmp.eq.f32.partialorder %v70_v26, 0.0 }
  0xab   :  { %4959 = vrsqrt.f32 %v63_v27  ;;  %vm73_vm4 = vcmp.eq.f32.partialorder %v63_v27, inf  ;;  %v76_v35 = vand.u32 2147483648, %v63_v27  ;;  %vm75_vm5 = vcmp.eq.f32.partialorder %v63_v27, 0.0 }
  0xad   :  { %v66_v28 = vpop.xlane.xlu0 %65 }
  0xae   :  { %4961 = vrsqrt.f32 %v66_v28  ;;  %vm80_vm6 = vcmp.eq.f32.partialorder %v66_v28, inf  ;;  %v83_v42 = vand.u32 2147483648, %v66_v28  ;;  %vm82_vm7 = vcmp.eq.f32.partialorder %v66_v28, 0.0 }
  0xb7   :  { %v4958_v29 = vpop.eup %4957 }
  0xb8   :  { %v4960_v30 = vpop.eup %4959  ;;  %v86_v31 = vmul.f32 %v4958_v29, %v70_v26 }
  0xb9   :  { %v72_v33 = vmul.f32 %v4960_v30, %v63_v27 }
  0xba   :  { %v88_v34 = vsel %vm87_vm2, %v70_v26, %v86_v31  ;;  %v324_v31 = vld [vmem:[%s5922_s0] sm:$0xff] }
  0xbb   :  { %v4962_v36 = vpop.eup %4961  ;;  %v74_v37 = vsel %vm73_vm4, %v63_v27, %v72_v33  ;;  %v91_v38 = vsel %vm89_vm3, %v90_v32, %v88_v34  ;;  %v5445_v32 = vld [vmem:[#allocation6 + $0x8] sm:$0xff]  ;;  %v5447_v33 = vld [vmem:[#allocation6] sm:$0xff]  ;;  %v5451_v34 = vld [vmem:[#allocation6 + $0x18] sm:$0xff] }
  0xbc   :  { %v79_v39 = vmul.f32 %v4962_v36, %v66_v28  ;;  %v77_v40 = vsel %vm75_vm5, %v76_v35, %v74_v37  ;;  %v97_v41 = vadd.f32 1e-07, %v91_v38  ;;  %vm94_vm10 = vcmp.gt.f32.partialorder %v91_v38, 2.0  ;;  %v325_v35 = vld [vmem:[%s5922_s0 + $0x8] sm:$0xff]  ;;  %v5461_v36 = vld [vmem:[#allocation6 + $0x10] sm:$0xff]  ;;  %v327_v38 = vld [vmem:[%s5922_s0 + $0x18] sm:$0xff] }
  0xbd   :  { %v95_v43 = vadd.f32 1e-07, %v77_v40  ;;  %vm92_vm8 = vcmp.gt.f32.partialorder %v77_v40, 2.0  ;;  %v326_v37 = vld [vmem:[%s5922_s0 + $0x10] sm:$0xff]  ;;  %v329_v40 = vld [vmem:[%s5922_s0 + $0x28] sm:$0xff] }
  0xbe   :  { %v81_v44 = vsel %vm80_vm6, %v66_v28, %v79_v39  ;;  %v328_v39 = vld [vmem:[%s5922_s0 + $0x20] sm:$0xff] }
  0xbf   :  { %4963 = vrcp.f32 %v95_v43  ;;  %v84_v45 = vsel %vm82_vm7, %v83_v42, %v81_v44  ;;  %v331_v42 = vld [vmem:[%s5922_s0 + $0x38] sm:$0xff]  ;;  %v642_v43 = vld [vmem:[%s5924_s2] sm:$0x3]  ;;  %v5517_v44 = vld [vmem:[#allocation6 + $0x48] sm:$0xff] }
  0xc0   :  { %v96_v46 = vadd.f32 1e-07, %v84_v45  ;;  %4965 = vrcp.f32 %v97_v41  ;;  %vm93_vm9 = vcmp.gt.f32.partialorder %v84_v45, 2.0  ;;  %v330_v41 = vld [vmem:[%s5922_s0 + $0x30] sm:$0xff]  ;;  %v5519_v45 = vld [vmem:[#allocation6 + $0x40] sm:$0xff] }
  0xc2   :  { %4967 = vrcp.f32 %v96_v46  ;;  %v5521_v46 = vld [vmem:[#allocation6 + $0x58] sm:$0xff] }
  0xcc   :  { %v4964_v47 = vpop.eup %4963 }
  0xcd   :  { %v4966_v48 = vpop.eup %4965  ;;  %v99_v49 = vmul.f32 2.0, %v4964_v47  ;;  %v4801_v47 = vld [vmem:[%s5924_s2 + $0x2] sm:$0x3] }
  0xce   :  { %v103_v54 = vmul.f32 2.0, %v4966_v48  ;;  %v5528_v48 = vld [vmem:[#allocation6 + $0x50] sm:$0xff] }
  0xcf   :  { %v4968_v50 = vpop.eup %4967  ;;  %v104_v51 = vsel %vm92_vm8, %v99_v49, 1.0  ;;  %v5540_v49 = vld [vmem:[#allocation6 + $0x28] sm:$0xff] }
  0xd0   :  { %v125_v52 = vmul.f32 %v104_v51, %v5364_v1  ;;  %v101_v53 = vmul.f32 2.0, %v4968_v50  ;;  %v106_v57 = vsel %vm94_vm10, %v103_v54, 1.0  ;;  %v143_v1 = vsub.s32 3, %v5424_v61  ;;  %v5543_v50 = vld [vmem:[#allocation6 + $0x38] sm:$0xff] }
  0xd1   :  { %v127_v58 = vmul.f32 %v106_v57, %v5359_v0 }
  0xd2   :  { %4775 = vmatmul.mubr.msk.f32.vlgmr.msra.gmra.mxu0 %vm60_vm1, %v125_v52  ;;  %v105_v55 = vsel %vm93_vm9, %v101_v53, 1.0  ;;  %v144_v9 = vrot.slane %v124_v7, %v143_v1 }
  0xd3   :  { %228 = vmatprep.mubr.f32.mxu0 %v5307_v14  ;;  %v126_v56 = vmul.f32 %v105_v55, %v5369_v2  ;;  %266 = vmatpush1.msra.mxu0 %v5380_v16  ;;  %v135_v2 = vsub.s32 1, %v5424_v61 }
  0xd4   :  { %267 = vmatprep.subr.mxu0 %v5383_v18 }
  0xd5   :  { %4779 = vmatmul.mubr.msk.f32.vlgmr.msra.gmra.mxu1 %vm60_vm1, %v126_v56  ;;  %268 = vmatpush1.msra.mxu0 %v5385_v19  ;;  %v136_v11 = vrot.slane %v124_v7, %v135_v2 }
  0xd6   :  { %4776 = vmatmul.mubr.msk.f32.gmra.mxu0 %vm60_vm1, %v126_v56  ;;  %317 = vmatprep.mubr.f32.mxu1 %v5307_v14 }
  0xd7   :  { %234 = vmatprep.mubr.f32.mxu0 %v5307_v14  ;;  %269 = vmatprep.subr.mxu0 %v5390_v22 }
  0xd8   :  { %270 = vmatpush1.msra.mxu0 %v5393_v23 }
  0xd9   :  { %4780 = vmatmul.mubr.msk.f32.gmra.mxu1 %vm60_vm1, %v127_v58  ;;  %271 = vmatprep.subr.mxu0 %v5395_v24 }
  0xda   :  { %4777 = vmatmul.mubr.msk.f32.gmra.mxu0 %vm60_vm1, %v127_v58  ;;  %547 = vmatprep.mubr.f32.mxu1 %v5307_v14 }
  0xdb   :  { %272 = vmatpush1.msra.mxu0 %v5398_v25  ;;  %305 = vmatprep.mubr.f32.mxu0 %v5307_v14 }
  0xde   :  { %4778 = vmatmul.mubr.msk.f32.vlgmr.msra.gmra.mxu0 %vm60_vm1, %v125_v52 }
  0xdf   :  { %434 = vmatprep.mubr.f32.mxu0 %v5307_v14 }
 0x192   :  { %v224_v60 = vpop.f32.mrf.mxu0 }
 0x193   :  { %v225_v29 = vadd.f32 %v224_v60, %v132_v15 }
 0x194   :  { %v226_v62 = vpop.f32.mrf.mxu0 }
 0x195   :  { %v313_v63 = vpop.f32.mrf.mxu1  ;;  %v227_v27 = vadd.f32 %v226_v62, %v136_v11 }
 0x196   :  { %v230_v0 = vpop.f32.mrf.mxu0  ;;  %v314_v23 = vadd.f32 %v313_v63, %v140_v12 }
 0x197   :  { %v315_v4 = vpop.f32.mrf.mxu1  ;;  %v231_v25 = vadd.f32 %v230_v0, %v132_v15 }
 0x198   :  { %v232_v6 = vpop.f32.mrf.mxu0  ;;  %v316_v20 = vadd.f32 %v315_v4, %v144_v9 }
 0x199   :  { %v319_v8 = vpop.f32.mrf.mxu1  ;;  %v233_v24 = vadd.f32 %v232_v6, %v136_v11 }
 0x19a   :  { %v236_v10 = vpop.f32.mrf.mxu0  ;;  %v320_v18 = vadd.f32 %v319_v8, %v140_v12 }
 0x19b   :  { %v321_v13 = vpop.f32.mrf.mxu1  ;;  %v237_v21 = vadd.f32 %v236_v10, %v132_v15 }
 0x19c   :  { %v238_v16 = vpop.f32.mrf.mxu0  ;;  %v322_v17 = vadd.f32 %v321_v13, %v144_v9 }
 0x19d   :  { %v239_v19 = vadd.f32 %v238_v16, %v136_v11 }
 0x19e   :  { %v307_v22 = vpop.f32.mrf.mxu0  ;;  %4791 = vmatprep.subr.msk.mxu1 %vm357_vm11, %v322_v17 }
 0x19f   :  { %4781 = vmatprep.subr.msk.mxu0 %vm357_vm11, %v239_v19  ;;  %4792 = vmatpush1.msk.msra.mxu1 %vm357_vm11, %v320_v18  ;;  %v308_v30 = vadd.f32 %v307_v22, %v140_v12 }
 0x1a0   :  { %v309_v26 = vpop.f32.mrf.mxu0  ;;  %4782 = vmatpush1.msk.msra.mxu0 %vm357_vm11, %v237_v21  ;;  %511 = vmatprep.subr.mxu1 %v316_v20 }
 0x1a1   :  { %v310_v28 = vadd.f32 %v309_v26, %v144_v9  ;;  %398 = vmatprep.subr.mxu0 %v233_v24  ;;  %512 = vmatpush1.msra.mxu1 %v314_v23 }
 0x1a2   :  { %399 = vmatpush1.msra.mxu0 %v231_v25 }
 0x1a3   :  { %400 = vmatprep.subr.mxu0 %v227_v27  ;;  %513 = vmatprep.subr.mxu1 %v310_v28 }
 0x1a4   :  { %401 = vmatpush1.msra.mxu0 %v225_v29  ;;  %514 = vmatpush1.msra.mxu1 %v308_v30 }
 0x1a5   :  { %4783 = vmatmul.mubr.msk.f32.vlgmr.msra.gmra.mxu0 %vm332_vm12, %v324_v31  ;;  %4793 = vmatmul.mubr.msk.f32.vlgmr.msra.gmra.mxu1 %vm332_vm12, %v324_v31 }
 0x1a6   :  { %683 = vmatprep.subr.mxu0 %v5445_v32  ;;  %440 = vmatprep.mubr.f32.mxu0 %v5307_v14 }
 0x1a7   :  { %684 = vmatpush1.msra.mxu0 %v5447_v33  ;;  %553 = vmatprep.mubr.f32.mxu1 %v5307_v14 }
 0x1a8   :  { %754 = vmatprep.subr.mxu1 %v5451_v34  ;;  %849 = vmatprep.subr.mxu0 %v5517_v44 }
 0x1a9   :  { %4784 = vmatmul.mubr.msk.f32.gmra.mxu0 %vm332_vm12, %v325_v35  ;;  %4794 = vmatmul.mubr.msk.f32.gmra.mxu1 %vm332_vm12, %v325_v35 }
 0x1aa   :  { %446 = vmatprep.mubr.f32.mxu0 %v5307_v14  ;;  %559 = vmatprep.mubr.f32.mxu1 %v5307_v14 }
 0x1ab   :  { %755 = vmatpush1.msra.mxu1 %v5461_v36 }
 0x1ac   :  { %920 = vmatprep.subr.mxu1 %v5521_v46 }
 0x1ad   :  { %4785 = vmatmul.mubr.msk.f32.gmra.mxu0 %vm332_vm12, %v326_v37  ;;  %4795 = vmatmul.mubr.msk.f32.gmra.mxu1 %vm332_vm12, %v326_v37 }
 0x1ae   :  { %452 = vmatprep.mubr.f32.mxu0 %v5307_v14  ;;  %565 = vmatprep.mubr.f32.mxu1 %v5307_v14 }
 0x1b1   :  { %4786 = vmatmul.mubr.msk.f32.gmra.mxu0 %vm332_vm12, %v327_v38  ;;  %4796 = vmatmul.mubr.msk.f32.gmra.mxu1 %vm332_vm12, %v327_v38 }
 0x1b2   :  { %458 = vmatprep.mubr.f32.mxu0 %v5307_v14  ;;  %571 = vmatprep.mubr.f32.mxu1 %v5307_v14 }
 0x1b5   :  { %4787 = vmatmul.mubr.msk.f32.gmra.mxu0 %vm332_vm12, %v328_v39  ;;  %4797 = vmatmul.mubr.msk.f32.gmra.mxu1 %vm332_vm12, %v328_v39 }
 0x1b6   :  { %464 = vmatprep.mubr.f32.mxu0 %v5307_v14  ;;  %577 = vmatprep.mubr.f32.mxu1 %v5307_v14 }
 0x1b9   :  { %4788 = vmatmul.mubr.msk.f32.gmra.mxu0 %vm332_vm12, %v329_v40  ;;  %4798 = vmatmul.mubr.msk.f32.gmra.mxu1 %vm332_vm12, %v329_v40 }
 0x1ba   :  { %470 = vmatprep.mubr.f32.mxu0 %v5307_v14  ;;  %583 = vmatprep.mubr.f32.mxu1 %v5307_v14 }
 0x1bd   :  { %4789 = vmatmul.mubr.msk.f32.gmra.mxu0 %vm332_vm12, %v330_v41  ;;  %4799 = vmatmul.mubr.msk.f32.gmra.mxu1 %vm332_vm12, %v330_v41 }
 0x1be   :  { %476 = vmatprep.mubr.f32.mxu0 %v5307_v14  ;;  %589 = vmatprep.mubr.f32.mxu1 %v5307_v14 }
 0x1c1   :  { %4790 = vmatmul.mubr.msk.f32.gmra.mxu0 %vm332_vm12, %v331_v42  ;;  %4800 = vmatmul.mubr.msk.f32.gmra.mxu1 %vm332_vm12, %v331_v42 }
 0x1c2   :  { %717 = vmatprep.mubr.f32.mxu0 %v5307_v14  ;;  %788 = vmatprep.mubr.f32.mxu1 %v5307_v14 }
 0x1c5   :  { %4804 = vmatmul.mubr.msk.f32.vlgmr.msra.gmra.mxu0 %vm649_vm13, %v642_v43  ;;  %4805 = vmatmul.mubr.msk.f32.vlgmr.msra.gmra.mxu1 %vm649_vm13, %v642_v43 }
 0x1c6   :  { %883 = vmatprep.mubr.f32.mxu0 %v5307_v14  ;;  %954 = vmatprep.mubr.f32.mxu1 %v5307_v14 }
 0x1c7   :  { %850 = vmatpush1.msra.mxu0 %v5519_v45  ;;  %921 = vmatpush1.msra.mxu1 %v5528_v48 }
 0x1c8   :  { %1026 = vmatprep.subr.mxu0 %v5445_v32  ;;  %1097 = vmatprep.subr.mxu1 %v5451_v34 }
 0x1c9   :  { %4806 = vmatmul.mubr.msk.f32.vlgmr.msra.gmra.mxu0 %vm649_vm13, %v4801_v47  ;;  %4807 = vmatmul.mubr.msk.f32.vlgmr.msra.gmra.mxu1 %vm649_vm13, %v4801_v47 }
 0x1ca   :  { %1027 = vmatpush1.msra.mxu0 %v5447_v33  ;;  %1060 = vmatprep.mubr.f32.mxu0 %v5307_v14 }
 0x1cb   :  { %1098 = vmatpush1.msra.mxu1 %v5461_v36  ;;  %1131 = vmatprep.mubr.f32.mxu1 %v5307_v14 }
 0x1cc   :  { %1168 = vmatprep.subr.mxu0 %v5540_v49  ;;  %1239 = vmatprep.subr.mxu1 %v5543_v50 }
 0x265   :  { %v436_v51 = vpop.f32.mrf.mxu0  ;;  %v549_v52 = vpop.f32.mrf.mxu1 }
 0x266   :  { %596 = vst [vmem:[#allocation2 + $0xb0] sm:$0xff] %v436_v51  ;;  %598 = vst [vmem:[#allocation2 + $0xd8] sm:$0xff] %v549_v52 }
 0x267   :  { %v438_v53 = vpop.f32.mrf.mxu0  ;;  %v551_v54 = vpop.f32.mrf.mxu1 }
 0x268   :  { %597 = vst [vmem:[#allocation2] sm:$0xff] %v438_v53  ;;  %599 = vst [vmem:[#allocation2 + $0x18] sm:$0xff] %v551_v54 }
 0x269   :  { %v442_v55 = vpop.f32.mrf.mxu0  ;;  %v555_v56 = vpop.f32.mrf.mxu1 }
 0x26a   :  { %600 = vst [vmem:[#allocation2 + $0x50] sm:$0xff] %v442_v55  ;;  %602 = vst [vmem:[#allocation2 + $0x30] sm:$0xff] %v555_v56  ;;  %v4802_v56 = vld [vmem:[%s5924_s2 + $0x4] sm:$0x3] }
 0x26b   :  { %v444_v57 = vpop.f32.mrf.mxu0  ;;  %v557_v58 = vpop.f32.mrf.mxu1 }
 0x26c   :  { %601 = vst [vmem:[#allocation2 + $0x68] sm:$0xff] %v444_v57  ;;  %603 = vst [vmem:[#allocation2 + $0x48] sm:$0xff] %v557_v58 }
 0x26d   :  { %v448_v59 = vpop.f32.mrf.mxu0  ;;  %v561_v60 = vpop.f32.mrf.mxu1  ;;  %v961_v26 = vld [vmem:[#allocation2 + $0xb0] sm:$0x3]  ;;  %v963_v42 = vld [vmem:[#allocation2 + $0xd8] sm:$0x3] }
 0x26e   :  { %604 = vst [vmem:[#allocation2 + $0x80] sm:$0xff] %v448_v59  ;;  %606 = vst [vmem:[#allocation2 + $0xe8] sm:$0xff] %v561_v60 }
 0x26f   :  { %v450_v62 = vpop.f32.mrf.mxu0  ;;  %v563_v63 = vpop.f32.mrf.mxu1  ;;  %v962_v29 = vld [vmem:[#allocation2] sm:$0x3]  ;;  %v964_v39 = vld [vmem:[#allocation2 + $0x18] sm:$0x3] }
 0x270   :  { %605 = vst [vmem:[#allocation2 + $0x88] sm:$0xff] %v450_v62  ;;  %607 = vst [vmem:[#allocation2 + $0xb8] sm:$0xff] %v563_v63 }
 0x271   :  { %v454_v0 = vpop.f32.mrf.mxu0  ;;  %v567_v4 = vpop.f32.mrf.mxu1 }
 0x272   :  { %608 = vst [vmem:[#allocation2 + $0x60] sm:$0xff] %v454_v0  ;;  %610 = vst [vmem:[#allocation2 + $0x8] sm:$0xff] %v567_v4 }
 0x273   :  { %v456_v6 = vpop.f32.mrf.mxu0  ;;  %v569_v7 = vpop.f32.mrf.mxu1 }
 0x274   :  { %609 = vst [vmem:[#allocation2 + $0xf0] sm:$0xff] %v456_v6  ;;  %611 = vst [vmem:[#allocation2 + $0x78] sm:$0xff] %v569_v7  ;;  %v5552_v7 = vld [vmem:[#allocation6 + $0x20] sm:$0xff] }
 0x275   :  { %v460_v8 = vpop.f32.mrf.mxu0  ;;  %v573_v9 = vpop.f32.mrf.mxu1 }
 0x276   :  { %612 = vst [vmem:[#allocation2 + $0x38] sm:$0xff] %v460_v8  ;;  %614 = vst [vmem:[#allocation2 + $0x40] sm:$0xff] %v573_v9  ;;  %v5554_v8 = vld [vmem:[#allocation6 + $0x30] sm:$0xff] }
 0x277   :  { %v462_v10 = vpop.f32.mrf.mxu0  ;;  %v575_v11 = vpop.f32.mrf.mxu1 }
 0x278   :  { %613 = vst [vmem:[#allocation2 + $0x58] sm:$0xff] %v462_v10  ;;  %615 = vst [vmem:[#allocation2 + $0xc8] sm:$0xff] %v575_v11  ;;  %v641_v11 = vld [vmem:[#allocation6 + $0x60] ss:$8 sm:$0xf] }
 0x279   :  { %v466_v12 = vpop.f32.mrf.mxu0  ;;  %v579_v13 = vpop.f32.mrf.mxu1 }
 0x27a   :  { %616 = vst [vmem:[#allocation2 + $0xe0] sm:$0xff] %v466_v12  ;;  %618 = vst [vmem:[#allocation2 + $0x70] sm:$0xff] %v579_v13 }
 0x27b   :  { %v468_v15 = vpop.f32.mrf.mxu0  ;;  %v581_v16 = vpop.f32.mrf.mxu1 }
 0x27c   :  { %617 = vst [vmem:[#allocation2 + $0x90] sm:$0xff] %v468_v15  ;;  %619 = vst [vmem:[#allocation2 + $0xc0] sm:$0xff] %v581_v16  ;;  %v5574_v15 = vrot.slane %v641_v11, %v131_v5 }
 0x27d   :  { %v472_v17 = vpop.f32.mrf.mxu0  ;;  %v585_v18 = vpop.f32.mrf.mxu1 }
 0x27e   :  { %620 = vst [vmem:[#allocation2 + $0xa8] sm:$0xff] %v472_v17  ;;  %622 = vst [vmem:[#allocation2 + $0x10] sm:$0xff] %v585_v18  ;;  %v1449_v17 = vld [vmem:[#allocation2 + $0x50] sm:$0x3] }
 0x27f   :  { %v474_v19 = vpop.f32.mrf.mxu0  ;;  %v587_v20 = vpop.f32.mrf.mxu1 }
 0x280   :  { %621 = vst [vmem:[#allocation2 + $0xd0] sm:$0xff] %v474_v19  ;;  %623 = vst [vmem:[#allocation2 + $0x28] sm:$0xff] %v587_v20  ;;  %v5578_v19 = vrot.slane %v641_v11, %v135_v2 }
 0x281   :  { %v478_v21 = vpop.f32.mrf.mxu0  ;;  %v591_v22 = vpop.f32.mrf.mxu1 }
 0x282   :  { %624 = vst [vmem:[#allocation2 + $0xa0] sm:$0xff] %v478_v21  ;;  %626 = vst [vmem:[#allocation2 + $0x20] sm:$0xff] %v591_v22  ;;  %v1450_v22 = vld [vmem:[#allocation2 + $0x68] sm:$0x3] }
 0x283   :  { %v480_v23 = vpop.f32.mrf.mxu0  ;;  %v593_v24 = vpop.f32.mrf.mxu1 }
 0x284   :  { %625 = vst [vmem:[#allocation2 + $0xf8] sm:$0xff] %v480_v23  ;;  %627 = vst [vmem:[#allocation2 + $0x98] sm:$0xff] %v593_v24 }
 0x285   :  { %v719_v25 = vpop.f32.mrf.mxu0  ;;  %v790_v35 = vpop.f32.mrf.mxu1 }
 0x286   :  { %v965_v27 = vadd.f32 %v961_v26, %v719_v25  ;;  %v967_v47 = vadd.f32 %v963_v42, %v790_v35 }
 0x287   :  { %v721_v28 = vpop.f32.mrf.mxu0  ;;  %v792_v38 = vpop.f32.mrf.mxu1 }
 0x288   :  { %v4808_v30 = vmul.f32 -1.442695, %v965_v27  ;;  %v966_v31 = vadd.f32 %v962_v29, %v721_v28  ;;  %v968_v40 = vadd.f32 %v964_v39, %v792_v38 }
 0x289   :  { %v956_v9 = vpop.f32.mrf.mxu1  ;;  %v885_v10 = vpop.f32.mrf.mxu0 }
 0x28a   :  { %4969 = vpow2.f32 %v4808_v30  ;;  %v4809_v37 = vmul.f32 -1.442695, %v966_v31  ;;  %v4810_v41 = vmul.f32 -1.442695, %v968_v40  ;;  %v886_v23 = vadd.f32 %v885_v10, %v5574_v15 }
 0x28b   :  { %v958_v12 = vpop.f32.mrf.mxu1  ;;  %v887_v13 = vpop.f32.mrf.mxu0  ;;  %v5584_v30 = vrot.slane %v641_v11, %v143_v1 }
 0x28c   :  { %4971 = vpow2.f32 %v4809_v37  ;;  %v888_v28 = vadd.f32 %v887_v13, %v5578_v19 }
 0x28d   :  { %4973 = vpow2.f32 %v4810_v41  ;;  %v959_v39 = vadd.f32 %v958_v12, %v5584_v30  ;;  %v5589_v41 = vrot.slane %v641_v11, %v139_v3  ;;  %v4803_v11 = vld [vmem:[%s5924_s2 + $0x6] sm:$0x3] }
 0x297   :  { %v4970_v43 = vpop.eup %4969 }
 0x298   :  { %v972_v51 = vadd.f32 1.0, %v4970_v43  ;;  %v1451_v43 = vld [vmem:[#allocation2 + $0x30] sm:$0x3] }
 0x299   :  { %v4972_v52 = vpop.eup %4971 }
 0x29a   :  { %4975 = vrcp.f32 %v972_v51  ;;  %v978_v53 = vadd.f32 1.0, %v4972_v52  ;;  %v4974_v54 = vpop.eup %4973  ;;  %v957_v51 = vadd.f32 %v956_v9, %v5589_v41 }
 0x29b   :  { %4977 = vtanh.f32 %v967_v47  ;;  %v985_v59 = vadd.f32 1.0, %v4974_v54 }
 0x29c   :  { %4979 = vrcp.f32 %v978_v53 }
 0x29d   :  { %4981 = vrcp.f32 %v985_v59 }
 0x2a7   :  { %v4976_v55 = vpop.eup %4975 }
 0x2a8   :  { %v4978_v57 = vpop.eup %4977 }
 0x2a9   :  { %v4980_v58 = vpop.eup %4979  ;;  %v989_v60 = vmul.f32 %v4978_v57, %v4976_v55  ;;  %v1452_v55 = vld [vmem:[#allocation2 + $0x48] sm:$0x3] }
 0x2aa   :  { %v988_v62 = vmul.f32 %v4980_v58, %v4802_v56  ;;  %v4982_v0 = vpop.eup %4981 }
 0x2ac   :  { %v5549_v63 = vadd.f32 %v989_v60, %v988_v62 }
 0x2ae   :  { %4983 = vtanh.f32 %v5549_v63 }
 0x2bb   :  { %v4984_v4 = vpop.eup %4983 }
 0x2bc   :  { %v992_v6 = vmul.f32 %v4984_v4, %v4982_v0 }
 0x2be   :  { %4811 = vmatmul.mubr.msk.f32.vlgmr.msra.gmra.mxu0 %vm649_vm13, %v992_v6  ;;  %4812 = vmatmul.mubr.msk.f32.vlgmr.msra.gmra.mxu1 %vm649_vm13, %v992_v6 }
 0x2bf   :  { %1169 = vmatpush1.msra.mxu0 %v5552_v7  ;;  %1202 = vmatprep.mubr.f32.mxu0 %v5307_v14 }
 0x2c0   :  { %1240 = vmatpush1.msra.mxu1 %v5554_v8  ;;  %1273 = vmatprep.mubr.f32.mxu1 %v5307_v14 }
 0x2c1   :  { %1337 = vmatprep.subr.mxu0 %v5517_v44  ;;  %1408 = vmatprep.subr.mxu1 %v5521_v46 }
 0x2c2   :  { %4813 = vmatmul.mubr.msk.f32.vlgmr.msra.gmra.mxu0 %vm649_vm13, %v992_v6  ;;  %4814 = vmatmul.mubr.msk.f32.vlgmr.msra.gmra.mxu1 %vm649_vm13, %v992_v6 }
 0x2c3   :  { %1338 = vmatpush1.msra.mxu0 %v5519_v45  ;;  %1371 = vmatprep.mubr.f32.mxu0 %v5307_v14 }
 0x2c4   :  { %1409 = vmatpush1.msra.mxu1 %v5528_v48  ;;  %1442 = vmatprep.mubr.f32.mxu1 %v5307_v14 }
 0x2c5   :  { %1514 = vmatprep.subr.mxu0 %v5445_v32  ;;  %1585 = vmatprep.subr.mxu1 %v5451_v34 }
 0x37e   :  { %v1062_v16 = vpop.f32.mrf.mxu0  ;;  %v1133_v18 = vpop.f32.mrf.mxu1 }
 0x37f   :  { %v1453_v20 = vadd.f32 %v1449_v17, %v1062_v16  ;;  %v1455_v47 = vadd.f32 %v1451_v43, %v1133_v18 }
 0x380   :  { %v1064_v21 = vpop.f32.mrf.mxu0  ;;  %v1135_v26 = vpop.f32.mrf.mxu1 }
 0x381   :  { %v4820_v24 = vmul.f32 -1.442695, %v1453_v20  ;;  %v1454_v25 = vadd.f32 %v1450_v22, %v1064_v21  ;;  %v1456_v57 = vadd.f32 %v1452_v55, %v1135_v26 }
 0x382   :  { %v1204_v27 = vpop.f32.mrf.mxu0  ;;  %v1275_v35 = vpop.f32.mrf.mxu1 }
 0x383   :  { %4985 = vpow2.f32 %v4820_v24  ;;  %v4821_v5 = vmul.f32 -1.442695, %v1454_v25  ;;  %v1205_v29 = vadd.f32 %v1204_v27, %v886_v23  ;;  %v1276_v59 = vadd.f32 %v1275_v35, %v957_v51 }
 0x384   :  { %v1206_v2 = vpop.f32.mrf.mxu0  ;;  %v1277_v40 = vpop.f32.mrf.mxu1  ;;  %v4822_v60 = vmul.f32 -1.442695, %v1456_v57 }
 0x385   :  { %4987 = vpow2.f32 %v4821_v5  ;;  %v4815_v31 = vmul.f32 -1.442695, %v1205_v29  ;;  %v1207_v37 = vadd.f32 %v1206_v2, %v888_v28  ;;  %v1278_v42 = vadd.f32 %v1277_v40, %v959_v39  ;;  %v1937_v39 = vld [vmem:[#allocation2 + $0x80] sm:$0x3] }
 0x387   :  { %4989 = vpow2.f32 %v4815_v31  ;;  %v4816_v38 = vmul.f32 -1.442695, %v1207_v37  ;;  %v4817_v52 = vmul.f32 -1.442695, %v1278_v42 }
 0x389   :  { %4991 = vpow2.f32 %v4816_v38 }
 0x38a   :  { %4993 = vtanh.f32 %v1455_v47  ;;  %v1938_v47 = vld [vmem:[#allocation2 + $0x88] sm:$0x3] }
 0x38b   :  { %4995 = vpow2.f32 %v4817_v52 }
 0x390   :  { %v4986_v1 = vpop.eup %4985 }
 0x391   :  { %v1460_v54 = vadd.f32 1.0, %v4986_v1 }
 0x392   :  { %v4988_v53 = vpop.eup %4987 }
 0x393   :  { %v1466_v56 = vadd.f32 1.0, %v4988_v53 }
 0x394   :  { %v4990_v58 = vpop.eup %4989 }
 0x395   :  { %4997 = vrcp.f32 %v1466_v56  ;;  %v1283_v61 = vadd.f32 1.0, %v4990_v58 }
 0x396   :  { %v4992_v3 = vpop.eup %4991  ;;  %4999 = vrcp.f32 %v1460_v54 }
 0x397   :  { %5001 = vrcp.f32 %v1283_v61  ;;  %v1289_v62 = vadd.f32 1.0, %v4992_v3  ;;  %v4994_v0 = vpop.eup %4993 }
 0x398   :  { %5003 = vtanh.f32 %v1276_v59  ;;  %v4996_v4 = vpop.eup %4995 }
 0x399   :  { %5005 = vrcp.f32 %v1289_v62  ;;  %v1296_v17 = vadd.f32 1.0, %v4996_v4 }
 0x39a   :  { %5007 = vpow2.f32 %v4822_v60 }
 0x39b   :  { %5009 = vrcp.f32 %v1296_v17  ;;  %v1940_v17 = vld [vmem:[#allocation2 + $0xb8] sm:$0x3] }
 0x3a2   :  { %v4998_v6 = vpop.eup %4997 }
 0x3a3   :  { %v5000_v9 = vpop.eup %4999  ;;  %v1476_v13 = vmul.f32 %v4998_v6, %v5549_v63  ;;  %v1939_v6 = vld [vmem:[#allocation2 + $0xe8] sm:$0x3] }
 0x3a4   :  { %v5002_v10 = vpop.eup %5001  ;;  %v1477_v18 = vmul.f32 %v5000_v9, %v4994_v0 }
 0x3a5   :  { %v5004_v12 = vpop.eup %5003 }
 0x3a6   :  { %v5006_v16 = vpop.eup %5005  ;;  %v1300_v20 = vmul.f32 %v5004_v12, %v5002_v10  ;;  %v5596_v23 = vadd.f32 %v1477_v18, %v1476_v13 }
 0x3a7   :  { %v1299_v21 = vmul.f32 %v5006_v16, %v4803_v11  ;;  %v5008_v22 = vpop.eup %5007 }
 0x3a8   :  { %v1473_v25 = vadd.f32 1.0, %v5008_v22  ;;  %v5010_v26 = vpop.eup %5009 }
 0x3a9   :  { %v5598_v24 = vadd.f32 %v1300_v20, %v1299_v21 }
 0x3ab   :  { %5011 = vtanh.f32 %v5598_v24 }
 0x3ac   :  { %5013 = vtanh.f32 %v5596_v23 }
 0x3ad   :  { %5015 = vrcp.f32 %v1473_v25 }
 0x3b8   :  { %v5012_v27 = vpop.eup %5011 }
 0x3b9   :  { %v1303_v63 = vmul.f32 %v5012_v27, %v5010_v26  ;;  %v5014_v28 = vpop.eup %5013 }
 0x3ba   :  { %v5016_v5 = vpop.eup %5015 }
 0x3bb   :  { %4818 = vmatmul.mubr.msk.f32.vlgmr.msra.gmra.mxu0 %vm649_vm13, %v1303_v63  ;;  %4819 = vmatmul.mubr.msk.f32.vlgmr.msra.gmra.mxu1 %vm649_vm13, %v1303_v63  ;;  %v1480_v29 = vmul.f32 %v5016_v5, %v5014_v28 }
 0x3bc   :  { %1515 = vmatpush1.msra.mxu0 %v5447_v33  ;;  %1548 = vmatprep.mubr.f32.mxu0 %v5307_v14 }
 0x3bd   :  { %1586 = vmatpush1.msra.mxu1 %v5461_v36  ;;  %1619 = vmatprep.mubr.f32.mxu1 %v5307_v14 }
 0x3be   :  { %1656 = vmatprep.subr.mxu0 %v5540_v49  ;;  %1727 = vmatprep.subr.mxu1 %v5543_v50 }
 0x3bf   :  { %4823 = vmatmul.mubr.msk.f32.vlgmr.msra.gmra.mxu0 %vm649_vm13, %v1480_v29  ;;  %4824 = vmatmul.mubr.msk.f32.vlgmr.msra.gmra.mxu1 %vm649_vm13, %v1480_v29 }
 0x3c0   :  { %1657 = vmatpush1.msra.mxu0 %v5552_v7  ;;  %1690 = vmatprep.mubr.f32.mxu0 %v5307_v14 }
 0x3c1   :  { %1728 = vmatpush1.msra.mxu1 %v5554_v8  ;;  %1761 = vmatprep.mubr.f32.mxu1 %v5307_v14 }
 0x3c2   :  { %1825 = vmatprep.subr.mxu0 %v5517_v44  ;;  %1896 = vmatprep.subr.mxu1 %v5521_v46 }
 0x3c3   :  { %4825 = vmatmul.mubr.msk.f32.vlgmr.msra.gmra.mxu0 %vm649_vm13, %v1480_v29  ;;  %4826 = vmatmul.mubr.msk.f32.vlgmr.msra.gmra.mxu1 %vm649_vm13, %v1480_v29 }
 0x3c4   :  { %1826 = vmatpush1.msra.mxu0 %v5519_v45  ;;  %1859 = vmatprep.mubr.f32.mxu0 %v5307_v14 }
 0x3c5   :  { %1897 = vmatpush1.msra.mxu1 %v5528_v48  ;;  %1930 = vmatprep.mubr.f32.mxu1 %v5307_v14 }
 0x3c6   :  { %2002 = vmatprep.subr.mxu0 %v5445_v32  ;;  %2073 = vmatprep.subr.mxu1 %v5451_v34 }
 0x47b   :  { %v1373_v2 = vpop.f32.mrf.mxu0  ;;  %v1444_v31 = vpop.f32.mrf.mxu1 }
 0x47c   :  { %v1374_v1 = vadd.f32 %v1373_v2, %v5574_v15  ;;  %v1445_v13 = vadd.f32 %v1444_v31, %v5589_v41 }
 0x47d   :  { %v1375_v35 = vpop.f32.mrf.mxu0  ;;  %v1446_v37 = vpop.f32.mrf.mxu1 }
 0x47e   :  { %v1376_v55 = vadd.f32 %v1375_v35, %v5578_v19  ;;  %v1447_v0 = vadd.f32 %v1446_v37, %v5584_v30 }
 0x47f   :  { %v1550_v38 = vpop.f32.mrf.mxu0  ;;  %v1621_v40 = vpop.f32.mrf.mxu1 }
 0x480   :  { %v1941_v42 = vadd.f32 %v1937_v39, %v1550_v38  ;;  %v1943_v9 = vadd.f32 %v1939_v6, %v1621_v40  ;;  %v2426_v6 = vld [vmem:[#allocation2 + $0xf0] sm:$0x3] }
 0x481   :  { %v1552_v43 = vpop.f32.mrf.mxu0  ;;  %v1623_v53 = vpop.f32.mrf.mxu1 }
 0x482   :  { %v4832_v51 = vmul.f32 -1.442695, %v1941_v42  ;;  %v1942_v52 = vadd.f32 %v1938_v47, %v1552_v43  ;;  %v1944_v20 = vadd.f32 %v1940_v17, %v1623_v53 }
 0x483   :  { %v1692_v54 = vpop.f32.mrf.mxu0  ;;  %v1763_v61 = vpop.f32.mrf.mxu1 }
 0x484   :  { %5017 = vpow2.f32 %v4832_v51  ;;  %v4833_v56 = vmul.f32 -1.442695, %v1942_v52  ;;  %v1693_v57 = vadd.f32 %v1692_v54, %v1374_v1  ;;  %v1764_v22 = vadd.f32 %v1763_v61, %v1445_v13 }
 0x485   :  { %v1694_v58 = vpop.f32.mrf.mxu0  ;;  %v1765_v62 = vpop.f32.mrf.mxu1  ;;  %v4834_v27 = vmul.f32 -1.442695, %v1944_v20 }
 0x486   :  { %5019 = vpow2.f32 %v4833_v56  ;;  %v4827_v59 = vmul.f32 -1.442695, %v1693_v57  ;;  %v1695_v3 = vadd.f32 %v1694_v58, %v1376_v55  ;;  %v1766_v4 = vadd.f32 %v1765_v62, %v1447_v0 }
 0x488   :  { %5021 = vpow2.f32 %v4827_v59  ;;  %v4828_v60 = vmul.f32 -1.442695, %v1695_v3  ;;  %v4829_v11 = vmul.f32 -1.442695, %v1766_v4 }
 0x48a   :  { %5023 = vpow2.f32 %v4828_v60  ;;  %v2425_v60 = vld [vmem:[#allocation2 + $0x60] sm:$0x3] }
 0x48b   :  { %5025 = vtanh.f32 %v1943_v9 }
 0x48c   :  { %5027 = vpow2.f32 %v4829_v11 }
 0x491   :  { %v5018_v10 = vpop.eup %5017 }
 0x492   :  { %v1948_v16 = vadd.f32 1.0, %v5018_v10 }
 0x493   :  { %v5020_v12 = vpop.eup %5019 }
 0x494   :  { %v1954_v18 = vadd.f32 1.0, %v5020_v12 }
 0x495   :  { %v5022_v21 = vpop.eup %5021 }
 0x496   :  { %5029 = vrcp.f32 %v1954_v18  ;;  %v1771_v25 = vadd.f32 1.0, %v5022_v21 }
 0x497   :  { %v5024_v26 = vpop.eup %5023  ;;  %5031 = vrcp.f32 %v1948_v16 }
 0x498   :  { %5033 = vrcp.f32 %v1771_v25  ;;  %v1777_v63 = vadd.f32 1.0, %v5024_v26  ;;  %v5026_v28 = vpop.eup %5025 }
 0x499   :  { %5035 = vtanh.f32 %v1764_v22  ;;  %v5028_v5 = vpop.eup %5027 }
 0x49a   :  { %5037 = vrcp.f32 %v1777_v63  ;;  %v1784_v39 = vadd.f32 1.0, %v5028_v5 }
 0x49b   :  { %5039 = vpow2.f32 %v4834_v27 }
 0x49c   :  { %5041 = vrcp.f32 %v1784_v39 }
 0x4a3   :  { %v5030_v29 = vpop.eup %5029 }
 0x4a4   :  { %v5032_v2 = vpop.eup %5031  ;;  %v1964_v37 = vmul.f32 %v5030_v29, %v5596_v23 }
 0x4a5   :  { %v5034_v31 = vpop.eup %5033  ;;  %v1965_v40 = vmul.f32 %v5032_v2, %v5026_v28  ;;  %v2427_v28 = vld [vmem:[#allocation2 + $0x8] sm:$0x3] }
 0x4a6   :  { %v5036_v35 = vpop.eup %5035 }
 0x4a7   :  { %v5038_v38 = vpop.eup %5037  ;;  %v1788_v42 = vmul.f32 %v5036_v35, %v5034_v31  ;;  %v5632_v1 = vadd.f32 %v1965_v40, %v1964_v37 }
 0x4a8   :  { %v1787_v43 = vmul.f32 %v5038_v38, %v5598_v24  ;;  %v5040_v47 = vpop.eup %5039  ;;  %v2428_v38 = vld [vmem:[#allocation2 + $0x78] sm:$0x3] }
 0x4a9   :  { %v1961_v52 = vadd.f32 1.0, %v5040_v47  ;;  %v5042_v53 = vpop.eup %5041 }
 0x4aa   :  { %v5634_v51 = vadd.f32 %v1788_v42, %v1787_v43 }
 0x4ac   :  { %5043 = vtanh.f32 %v5634_v51 }
 0x4ad   :  { %5045 = vtanh.f32 %v5632_v1 }
 0x4ae   :  { %5047 = vrcp.f32 %v1961_v52 }
 0x4b9   :  { %v5044_v23 = vpop.eup %5043 }
 0x4ba   :  { %v1791_v54 = vmul.f32 %v5044_v23, %v5042_v53  ;;  %v5046_v55 = vpop.eup %5045 }
 0x4bb   :  { %v5048_v24 = vpop.eup %5047 }
 0x4bc   :  { %4830 = vmatmul.mubr.msk.f32.vlgmr.msra.gmra.mxu0 %vm649_vm13, %v1791_v54  ;;  %4831 = vmatmul.mubr.msk.f32.vlgmr.msra.gmra.mxu1 %vm649_vm13, %v1791_v54  ;;  %v1968_v56 = vmul.f32 %v5048_v24, %v5046_v55 }
 0x4bd   :  { %2003 = vmatpush1.msra.mxu0 %v5447_v33  ;;  %2036 = vmatprep.mubr.f32.mxu0 %v5307_v14 }
 0x4be   :  { %2074 = vmatpush1.msra.mxu1 %v5461_v36  ;;  %2107 = vmatprep.mubr.f32.mxu1 %v5307_v14 }
 0x4bf   :  { %2144 = vmatprep.subr.mxu0 %v5540_v49  ;;  %2215 = vmatprep.subr.mxu1 %v5543_v50 }
 0x4c0   :  { %4835 = vmatmul.mubr.msk.f32.vlgmr.msra.gmra.mxu0 %vm649_vm13, %v1968_v56  ;;  %4836 = vmatmul.mubr.msk.f32.vlgmr.msra.gmra.mxu1 %vm649_vm13, %v1968_v56 }
 0x4c1   :  { %2145 = vmatpush1.msra.mxu0 %v5552_v7  ;;  %2178 = vmatprep.mubr.f32.mxu0 %v5307_v14 }
 0x4c2   :  { %2216 = vmatpush1.msra.mxu1 %v5554_v8  ;;  %2249 = vmatprep.mubr.f32.mxu1 %v5307_v14 }
 0x4c3   :  { %2313 = vmatprep.subr.mxu0 %v5517_v44  ;;  %2384 = vmatprep.subr.mxu1 %v5521_v46 }
 0x4c4   :  { %4837 = vmatmul.mubr.msk.f32.vlgmr.msra.gmra.mxu0 %vm649_vm13, %v1968_v56  ;;  %4838 = vmatmul.mubr.msk.f32.vlgmr.msra.gmra.mxu1 %vm649_vm13, %v1968_v56 }
 0x4c5   :  { %2314 = vmatpush1.msra.mxu0 %v5519_v45  ;;  %2347 = vmatprep.mubr.f32.mxu0 %v5307_v14 }
 0x4c6   :  { %2385 = vmatpush1.msra.mxu1 %v5528_v48  ;;  %2418 = vmatprep.mubr.f32.mxu1 %v5307_v14 }
 0x4c7   :  { %2490 = vmatprep.subr.mxu0 %v5445_v32  ;;  %2561 = vmatprep.subr.mxu1 %v5451_v34 }
 0x57c   :  { %v1861_v57 = vpop.f32.mrf.mxu0  ;;  %v1932_v58 = vpop.f32.mrf.mxu1 }
 0x57d   :  { %v1862_v9 = vadd.f32 %v1861_v57, %v5574_v15  ;;  %v1933_v35 = vadd.f32 %v1932_v58, %v5589_v41 }
 0x57e   :  { %v1863_v59 = vpop.f32.mrf.mxu0  ;;  %v1934_v61 = vpop.f32.mrf.mxu1 }
 0x57f   :  { %v1864_v32 = vadd.f32 %v1863_v59, %v5578_v19  ;;  %v1935_v27 = vadd.f32 %v1934_v61, %v5584_v30 }
 0x580   :  { %v2038_v3 = vpop.f32.mrf.mxu0  ;;  %v2109_v62 = vpop.f32.mrf.mxu1 }
 0x581   :  { %v2429_v0 = vadd.f32 %v2425_v60, %v2038_v3  ;;  %v2431_v5 = vadd.f32 %v2427_v28, %v2109_v62 }
 0x582   :  { %v2040_v4 = vpop.f32.mrf.mxu0  ;;  %v2111_v12 = vpop.f32.mrf.mxu1 }
 0x583   :  { %v4844_v10 = vmul.f32 -1.442695, %v2429_v0  ;;  %v2430_v11 = vadd.f32 %v2426_v6, %v2040_v4  ;;  %v2432_v40 = vadd.f32 %v2428_v38, %v2111_v12 }
 0x584   :  { %v2180_v13 = vpop.f32.mrf.mxu0  ;;  %v2251_v21 = vpop.f32.mrf.mxu1 }
 0x585   :  { %5049 = vpow2.f32 %v4844_v10  ;;  %v4845_v16 = vmul.f32 -1.442695, %v2430_v11  ;;  %v2181_v17 = vadd.f32 %v2180_v13, %v1862_v9  ;;  %v2252_v43 = vadd.f32 %v2251_v21, %v1933_v35 }
 0x586   :  { %v2182_v18 = vpop.f32.mrf.mxu0  ;;  %v2253_v26 = vpop.f32.mrf.mxu1  ;;  %v4846_v53 = vmul.f32 -1.442695, %v2432_v40 }
 0x587   :  { %5051 = vpow2.f32 %v4845_v16  ;;  %v4839_v20 = vmul.f32 -1.442695, %v2181_v17  ;;  %v2183_v22 = vadd.f32 %v2182_v18, %v1864_v32  ;;  %v2254_v63 = vadd.f32 %v2253_v26, %v1935_v27  ;;  %v2913_v16 = vld [vmem:[#allocation2 + $0x38] sm:$0x3] }
 0x589   :  { %5053 = vpow2.f32 %v4839_v20  ;;  %v4840_v25 = vmul.f32 -1.442695, %v2183_v22  ;;  %v4841_v2 = vmul.f32 -1.442695, %v2254_v63  ;;  %v2914_v20 = vld [vmem:[#allocation2 + $0x58] sm:$0x3] }
 0x58b   :  { %5055 = vpow2.f32 %v4840_v25 }
 0x58c   :  { %5057 = vtanh.f32 %v2431_v5 }
 0x58d   :  { %5059 = vpow2.f32 %v4841_v2 }
 0x592   :  { %v5050_v29 = vpop.eup %5049 }
 0x593   :  { %v2436_v37 = vadd.f32 1.0, %v5050_v29 }
 0x594   :  { %v5052_v31 = vpop.eup %5051 }
 0x595   :  { %v2442_v39 = vadd.f32 1.0, %v5052_v31 }
 0x596   :  { %v5054_v42 = vpop.eup %5053 }
 0x597   :  { %5061 = vrcp.f32 %v2442_v39  ;;  %v2259_v47 = vadd.f32 1.0, %v5054_v42  ;;  %v2915_v39 = vld [vmem:[#allocation2 + $0x40] sm:$0x3] }
 0x598   :  { %v5056_v52 = vpop.eup %5055  ;;  %5063 = vrcp.f32 %v2436_v37 }
 0x599   :  { %5065 = vrcp.f32 %v2259_v47  ;;  %v2265_v23 = vadd.f32 1.0, %v5056_v52  ;;  %v5058_v54 = vpop.eup %5057 }
 0x59a   :  { %5067 = vtanh.f32 %v2252_v43  ;;  %v5060_v55 = vpop.eup %5059 }
 0x59b   :  { %5069 = vrcp.f32 %v2265_v23  ;;  %v2272_v3 = vadd.f32 1.0, %v5060_v55  ;;  %v2916_v23 = vld [vmem:[#allocation2 + $0xc8] sm:$0x3] }
 0x59c   :  { %5071 = vpow2.f32 %v4846_v53 }
 0x59d   :  { %5073 = vrcp.f32 %v2272_v3 }
 0x5a4   :  { %v5062_v24 = vpop.eup %5061 }
 0x5a5   :  { %v5064_v56 = vpop.eup %5063  ;;  %v2452_v59 = vmul.f32 %v5062_v24, %v5632_v1 }
 0x5a6   :  { %v5066_v57 = vpop.eup %5065  ;;  %v2453_v60 = vmul.f32 %v5064_v56, %v5058_v54 }
 0x5a7   :  { %v5068_v58 = vpop.eup %5067 }
 0x5a8   :  { %v5070_v61 = vpop.eup %5069  ;;  %v2276_v62 = vmul.f32 %v5068_v58, %v5066_v57  ;;  %v5668_v6 = vadd.f32 %v2453_v60, %v2452_v59 }
 0x5a9   :  { %v2275_v0 = vmul.f32 %v5070_v61, %v5634_v51  ;;  %v5072_v4 = vpop.eup %5071 }
 0x5aa   :  { %v2449_v10 = vadd.f32 1.0, %v5072_v4  ;;  %v5074_v11 = vpop.eup %5073 }
 0x5ab   :  { %v5670_v9 = vadd.f32 %v2276_v62, %v2275_v0 }
 0x5ad   :  { %5075 = vtanh.f32 %v5670_v9 }
 0x5ae   :  { %5077 = vtanh.f32 %v5668_v6 }
 0x5af   :  { %5079 = vrcp.f32 %v2449_v10 }
 0x5ba   :  { %v5076_v1 = vpop.eup %5075 }
 0x5bb   :  { %v2279_v12 = vmul.f32 %v5076_v1, %v5074_v11  ;;  %v5078_v13 = vpop.eup %5077 }
 0x5bc   :  { %v5080_v51 = vpop.eup %5079 }
 0x5bd   :  { %4842 = vmatmul.mubr.msk.f32.vlgmr.msra.gmra.mxu0 %vm649_vm13, %v2279_v12  ;;  %4843 = vmatmul.mubr.msk.f32.vlgmr.msra.gmra.mxu1 %vm649_vm13, %v2279_v12  ;;  %v2456_v32 = vmul.f32 %v5080_v51, %v5078_v13 }
 0x5be   :  { %2491 = vmatpush1.msra.mxu0 %v5447_v33  ;;  %2524 = vmatprep.mubr.f32.mxu0 %v5307_v14  ;;  %v5696_v33 = vld [vmem:[#allocation6 + $0x8] sm:$0xff] }
 0x5bf   :  { %2562 = vmatpush1.msra.mxu1 %v5461_v36  ;;  %2595 = vmatprep.mubr.f32.mxu1 %v5307_v14 }
 0x5c0   :  { %2632 = vmatprep.subr.mxu0 %v5540_v49  ;;  %2703 = vmatprep.subr.mxu1 %v5543_v50 }
 0x5c1   :  { %4847 = vmatmul.mubr.msk.f32.vlgmr.msra.gmra.mxu0 %vm649_vm13, %v2456_v32  ;;  %4848 = vmatmul.mubr.msk.f32.vlgmr.msra.gmra.mxu1 %vm649_vm13, %v2456_v32 }
 0x5c2   :  { %2633 = vmatpush1.msra.mxu0 %v5552_v7  ;;  %2666 = vmatprep.mubr.f32.mxu0 %v5307_v14 }
 0x5c3   :  { %2704 = vmatpush1.msra.mxu1 %v5554_v8  ;;  %2737 = vmatprep.mubr.f32.mxu1 %v5307_v14 }
 0x5c4   :  { %2801 = vmatprep.subr.mxu0 %v5517_v44  ;;  %2872 = vmatprep.subr.mxu1 %v5521_v46 }
 0x5c5   :  { %4849 = vmatmul.mubr.msk.f32.vlgmr.msra.gmra.mxu0 %vm649_vm13, %v2456_v32  ;;  %4850 = vmatmul.mubr.msk.f32.vlgmr.msra.gmra.mxu1 %vm649_vm13, %v2456_v32 }
 0x5c6   :  { %2802 = vmatpush1.msra.mxu0 %v5519_v45  ;;  %2835 = vmatprep.mubr.f32.mxu0 %v5307_v14 }
 0x5c7   :  { %2873 = vmatpush1.msra.mxu1 %v5528_v48  ;;  %2906 = vmatprep.mubr.f32.mxu1 %v5307_v14 }
 0x5c8   :  { %2978 = vmatprep.subr.mxu0 %v5696_v33  ;;  %3049 = vmatprep.subr.mxu1 %v5451_v34 }
 0x67d   :  { %v2349_v36 = vpop.f32.mrf.mxu0  ;;  %v2420_v44 = vpop.f32.mrf.mxu1 }
 0x67e   :  { %v2350_v48 = vadd.f32 %v2349_v36, %v5574_v15  ;;  %v2421_v52 = vadd.f32 %v2420_v44, %v5589_v41 }
 0x67f   :  { %v2351_v46 = vpop.f32.mrf.mxu0  ;;  %v2422_v49 = vpop.f32.mrf.mxu1 }
 0x680   :  { %v2352_v27 = vadd.f32 %v2351_v46, %v5578_v19  ;;  %v2423_v37 = vadd.f32 %v2422_v49, %v5584_v30 }
 0x681   :  { %v2526_v50 = vpop.f32.mrf.mxu0  ;;  %v2597_v17 = vpop.f32.mrf.mxu1 }
 0x682   :  { %v2917_v45 = vadd.f32 %v2913_v16, %v2526_v50  ;;  %v2919_v40 = vadd.f32 %v2915_v39, %v2597_v17 }
 0x683   :  { %v2528_v18 = vpop.f32.mrf.mxu0  ;;  %v2599_v25 = vpop.f32.mrf.mxu1 }
 0x684   :  { %v4856_v21 = vmul.f32 -1.442695, %v2917_v45  ;;  %v2918_v22 = vadd.f32 %v2914_v20, %v2528_v18  ;;  %v2920_v55 = vadd.f32 %v2916_v23, %v2599_v25  ;;  %v5714_v45 = vld [vmem:[#allocation6] sm:$0xff]  ;;  %v5718_v18 = vld [vmem:[#allocation6 + $0x10] sm:$0xff]  ;;  %v5737_v25 = vld [vmem:[#allocation6 + $0x58] sm:$0xff] }
 0x685   :  { %v2668_v26 = vpop.f32.mrf.mxu0  ;;  %v2739_v29 = vpop.f32.mrf.mxu1 }
 0x686   :  { %5081 = vpow2.f32 %v4856_v21  ;;  %v4857_v34 = vmul.f32 -1.442695, %v2918_v22  ;;  %v2669_v63 = vadd.f32 %v2668_v26, %v2350_v48  ;;  %v2740_v56 = vadd.f32 %v2739_v29, %v2421_v52  ;;  %v5722_v48 = vld [vmem:[#allocation6 + $0x28] sm:$0xff]  ;;  %v5725_v21 = vld [vmem:[#allocation6 + $0x38] sm:$0xff]  ;;  %v5742_v26 = vld [vmem:[#allocation6 + $0x40] sm:$0xff] }
 0x687   :  { %v2670_v28 = vpop.f32.mrf.mxu0  ;;  %v2741_v35 = vpop.f32.mrf.mxu1  ;;  %v4858_v59 = vmul.f32 -1.442695, %v2920_v55  ;;  %v5734_v22 = vld [vmem:[#allocation6 + $0x48] sm:$0xff]  ;;  %v3401_v29 = vld [vmem:[#allocation2 + $0xe0] sm:$0x3] }
 0x688   :  { %5083 = vpow2.f32 %v4857_v34  ;;  %v4851_v5 = vmul.f32 -1.442695, %v2669_v63  ;;  %v2671_v2 = vadd.f32 %v2670_v28, %v2352_v27  ;;  %v2742_v38 = vadd.f32 %v2741_v35, %v2423_v37  ;;  %v3402_v37 = vld [vmem:[#allocation2 + $0x90] sm:$0x3] }
 0x68a   :  { %5085 = vpow2.f32 %v4851_v5  ;;  %v4852_v31 = vmul.f32 -1.442695, %v2671_v2  ;;  %v4853_v43 = vmul.f32 -1.442695, %v2742_v38 }
 0x68c   :  { %5087 = vpow2.f32 %v4852_v31 }
 0x68d   :  { %5089 = vtanh.f32 %v2919_v40 }
 0x68e   :  { %5091 = vpow2.f32 %v4853_v43 }
 0x693   :  { %v5082_v42 = vpop.eup %5081 }
 0x694   :  { %v2924_v53 = vadd.f32 1.0, %v5082_v42 }
 0x695   :  { %v5084_v47 = vpop.eup %5083 }
 0x696   :  { %v2930_v54 = vadd.f32 1.0, %v5084_v47 }
 0x697   :  { %v5086_v24 = vpop.eup %5085 }
 0x698   :  { %5093 = vrcp.f32 %v2930_v54  ;;  %v2747_v57 = vadd.f32 1.0, %v5086_v24 }
 0x699   :  { %v5088_v58 = vpop.eup %5087  ;;  %5095 = vrcp.f32 %v2924_v53 }
 0x69a   :  { %5097 = vrcp.f32 %v2747_v57  ;;  %v2753_v61 = vadd.f32 1.0, %v5088_v58  ;;  %v5090_v3 = vpop.eup %5089 }
 0x69b   :  { %5099 = vtanh.f32 %v2740_v56  ;;  %v5092_v60 = vpop.eup %5091 }
 0x69c   :  { %5101 = vrcp.f32 %v2753_v61  ;;  %v2760_v12 = vadd.f32 1.0, %v5092_v60  ;;  %v3403_v61 = vld [vmem:[#allocation2 + $0x70] sm:$0x3] }
 0x69d   :  { %5103 = vpow2.f32 %v4858_v59 }
 0x69e   :  { %5105 = vrcp.f32 %v2760_v12 }
 0x6a5   :  { %v5094_v62 = vpop.eup %5093 }
 0x6a6   :  { %v5096_v0 = vpop.eup %5095  ;;  %v2940_v11 = vmul.f32 %v5094_v62, %v5668_v6 }
 0x6a7   :  { %v5098_v4 = vpop.eup %5097  ;;  %v2941_v13 = vmul.f32 %v5096_v0, %v5090_v3 }
 0x6a8   :  { %v5100_v10 = vpop.eup %5099 }
 0x6a9   :  { %v5102_v1 = vpop.eup %5101  ;;  %v2764_v51 = vmul.f32 %v5100_v10, %v5098_v4  ;;  %v5706_v44 = vadd.f32 %v2941_v13, %v2940_v11  ;;  %v3404_v11 = vld [vmem:[#allocation2 + $0xc0] sm:$0x3] }
 0x6aa   :  { %v2763_v32 = vmul.f32 %v5102_v1, %v5670_v9  ;;  %v5104_v36 = vpop.eup %5103 }
 0x6ab   :  { %v2937_v49 = vadd.f32 1.0, %v5104_v36  ;;  %v5106_v50 = vpop.eup %5105 }
 0x6ac   :  { %v5708_v46 = vadd.f32 %v2764_v51, %v2763_v32 }
 0x6ae   :  { %5107 = vtanh.f32 %v5708_v46 }
 0x6af   :  { %5109 = vtanh.f32 %v5706_v44 }
 0x6b0   :  { %5111 = vrcp.f32 %v2937_v49 }
 0x6bb   :  { %v5108_v6 = vpop.eup %5107 }
 0x6bc   :  { %v2767_v16 = vmul.f32 %v5108_v6, %v5106_v50  ;;  %v5110_v17 = vpop.eup %5109 }
 0x6bd   :  { %v5112_v9 = vpop.eup %5111 }
 0x6be   :  { %4854 = vmatmul.mubr.msk.f32.vlgmr.msra.gmra.mxu0 %vm649_vm13, %v2767_v16  ;;  %4855 = vmatmul.mubr.msk.f32.vlgmr.msra.gmra.mxu1 %vm649_vm13, %v2767_v16  ;;  %v2944_v20 = vmul.f32 %v5112_v9, %v5110_v17 }
 0x6bf   :  { %2979 = vmatpush1.msra.mxu0 %v5714_v45  ;;  %3012 = vmatprep.mubr.f32.mxu0 %v5307_v14 }
 0x6c0   :  { %3050 = vmatpush1.msra.mxu1 %v5718_v18  ;;  %3083 = vmatprep.mubr.f32.mxu1 %v5307_v14 }
 0x6c1   :  { %3120 = vmatprep.subr.mxu0 %v5722_v48  ;;  %3191 = vmatprep.subr.mxu1 %v5725_v21 }
 0x6c2   :  { %4859 = vmatmul.mubr.msk.f32.vlgmr.msra.gmra.mxu0 %vm649_vm13, %v2944_v20  ;;  %4860 = vmatmul.mubr.msk.f32.vlgmr.msra.gmra.mxu1 %vm649_vm13, %v2944_v20 }
 0x6c3   :  { %3121 = vmatpush1.msra.mxu0 %v5552_v7  ;;  %3154 = vmatprep.mubr.f32.mxu0 %v5307_v14  ;;  %v5746_v7 = vld [vmem:[#allocation6 + $0x50] sm:$0xff] }
 0x6c4   :  { %3192 = vmatpush1.msra.mxu1 %v5554_v8  ;;  %3225 = vmatprep.mubr.f32.mxu1 %v5307_v14  ;;  %v5751_v8 = vld [vmem:[#allocation6 + $0x18] sm:$0xff] }
 0x6c5   :  { %3289 = vmatprep.subr.mxu0 %v5734_v22  ;;  %3360 = vmatprep.subr.mxu1 %v5737_v25 }
 0x6c6   :  { %4861 = vmatmul.mubr.msk.f32.vlgmr.msra.gmra.mxu0 %vm649_vm13, %v2944_v20  ;;  %4862 = vmatmul.mubr.msk.f32.vlgmr.msra.gmra.mxu1 %vm649_vm13, %v2944_v20 }
 0x6c7   :  { %3290 = vmatpush1.msra.mxu0 %v5742_v26  ;;  %3323 = vmatprep.mubr.f32.mxu0 %v5307_v14 }
 0x6c8   :  { %3361 = vmatpush1.msra.mxu1 %v5746_v7  ;;  %3394 = vmatprep.mubr.f32.mxu1 %v5307_v14 }
 0x6c9   :  { %3466 = vmatprep.subr.mxu0 %v5696_v33  ;;  %3537 = vmatprep.subr.mxu1 %v5751_v8 }
 0x77e   :  { %v2837_v27 = vpop.f32.mrf.mxu0  ;;  %v2908_v34 = vpop.f32.mrf.mxu1 }
 0x77f   :  { %v2838_v38 = vadd.f32 %v2837_v27, %v5574_v15  ;;  %v2909_v4 = vadd.f32 %v2908_v34, %v5589_v41 }
 0x780   :  { %v2839_v63 = vpop.f32.mrf.mxu0  ;;  %v2910_v28 = vpop.f32.mrf.mxu1 }
 0x781   :  { %v2840_v47 = vadd.f32 %v2839_v63, %v5578_v19  ;;  %v2911_v58 = vadd.f32 %v2910_v28, %v5584_v30 }
 0x782   :  { %v3014_v5 = vpop.f32.mrf.mxu0  ;;  %v3085_v2 = vpop.f32.mrf.mxu1 }
 0x783   :  { %v3405_v31 = vadd.f32 %v3401_v29, %v3014_v5  ;;  %v3407_v3 = vadd.f32 %v3403_v61, %v3085_v2  ;;  %v3890_v61 = vld [vmem:[#allocation2 + $0xd0] sm:$0x3] }
 0x784   :  { %v3016_v35 = vpop.f32.mrf.mxu0  ;;  %v3087_v42 = vpop.f32.mrf.mxu1 }
 0x785   :  { %v4868_v39 = vmul.f32 -1.442695, %v3405_v31  ;;  %v3406_v40 = vadd.f32 %v3402_v37, %v3016_v35  ;;  %v3408_v12 = vadd.f32 %v3404_v11, %v3087_v42 }
 0x786   :  { %v3156_v43 = vpop.f32.mrf.mxu0  ;;  %v3227_v55 = vpop.f32.mrf.mxu1 }
 0x787   :  { %5113 = vpow2.f32 %v4868_v39  ;;  %v4869_v52 = vmul.f32 -1.442695, %v3406_v40  ;;  %v3157_v53 = vadd.f32 %v3156_v43, %v2838_v38  ;;  %v3228_v51 = vadd.f32 %v3227_v55, %v2909_v4 }
 0x788   :  { %v3158_v23 = vpop.f32.mrf.mxu0  ;;  %v3229_v57 = vpop.f32.mrf.mxu1  ;;  %v4870_v49 = vmul.f32 -1.442695, %v3408_v12 }
 0x789   :  { %5115 = vpow2.f32 %v4869_v52  ;;  %v4863_v54 = vmul.f32 -1.442695, %v3157_v53  ;;  %v3159_v24 = vadd.f32 %v3158_v23, %v2840_v47  ;;  %v3230_v59 = vadd.f32 %v3229_v57, %v2911_v58  ;;  %v5776_v47 = vld [vmem:[#allocation6 + $0x20] sm:$0xff]  ;;  %v5780_v52 = vld [vmem:[#allocation6 + $0x30] sm:$0xff] }
 0x78b   :  { %5117 = vpow2.f32 %v4863_v54  ;;  %v4864_v56 = vmul.f32 -1.442695, %v3159_v24  ;;  %v4865_v62 = vmul.f32 -1.442695, %v3230_v59 }
 0x78d   :  { %5119 = vpow2.f32 %v4864_v56  ;;  %v3889_v56 = vld [vmem:[#allocation2 + $0xa8] sm:$0x3] }
 0x78e   :  { %5121 = vtanh.f32 %v3407_v3 }
 0x78f   :  { %5123 = vpow2.f32 %v4865_v62 }
 0x794   :  { %v5114_v60 = vpop.eup %5113 }
 0x795   :  { %v3412_v10 = vadd.f32 1.0, %v5114_v60 }
 0x796   :  { %v5116_v0 = vpop.eup %5115 }
 0x797   :  { %v3418_v1 = vadd.f32 1.0, %v5116_v0 }
 0x798   :  { %v5118_v13 = vpop.eup %5117 }
 0x799   :  { %5125 = vrcp.f32 %v3418_v1  ;;  %v3235_v32 = vadd.f32 1.0, %v5118_v13 }
 0x79a   :  { %v5120_v36 = vpop.eup %5119  ;;  %5127 = vrcp.f32 %v3412_v10 }
 0x79b   :  { %5129 = vrcp.f32 %v3235_v32  ;;  %v3241_v50 = vadd.f32 1.0, %v5120_v36  ;;  %v5122_v6 = vpop.eup %5121 }
 0x79c   :  { %5131 = vtanh.f32 %v3228_v51  ;;  %v5124_v16 = vpop.eup %5123 }
 0x79d   :  { %5133 = vrcp.f32 %v3241_v50  ;;  %v3248_v28 = vadd.f32 1.0, %v5124_v16  ;;  %v3891_v50 = vld [vmem:[#allocation2 + $0x10] sm:$0x3] }
 0x79e   :  { %5135 = vpow2.f32 %v4870_v49 }
 0x79f   :  { %5137 = vrcp.f32 %v3248_v28 }
 0x7a6   :  { %v5126_v17 = vpop.eup %5125 }
 0x7a7   :  { %v5128_v9 = vpop.eup %5127  ;;  %v3428_v34 = vmul.f32 %v5126_v17, %v5706_v44 }
 0x7a8   :  { %v5130_v20 = vpop.eup %5129  ;;  %v3429_v5 = vmul.f32 %v5128_v9, %v5122_v6 }
 0x7a9   :  { %v5132_v27 = vpop.eup %5131 }
 0x7aa   :  { %v5134_v63 = vpop.eup %5133  ;;  %v3252_v29 = vmul.f32 %v5132_v27, %v5130_v20  ;;  %v5760_v35 = vadd.f32 %v3429_v5, %v3428_v34  ;;  %v3892_v34 = vld [vmem:[#allocation2 + $0x28] sm:$0x3] }
 0x7ab   :  { %v3251_v2 = vmul.f32 %v5134_v63, %v5708_v46  ;;  %v5136_v31 = vpop.eup %5135 }
 0x7ac   :  { %v3425_v38 = vadd.f32 1.0, %v5136_v31  ;;  %v5138_v39 = vpop.eup %5137 }
 0x7ad   :  { %v5762_v37 = vadd.f32 %v3252_v29, %v3251_v2 }
 0x7af   :  { %5139 = vtanh.f32 %v5762_v37 }
 0x7b0   :  { %5141 = vtanh.f32 %v5760_v35 }
 0x7b1   :  { %5143 = vrcp.f32 %v3425_v38 }
 0x7bc   :  { %v5140_v44 = vpop.eup %5139 }
 0x7bd   :  { %v3255_v40 = vmul.f32 %v5140_v44, %v5138_v39  ;;  %v5142_v42 = vpop.eup %5141 }
 0x7be   :  { %v5144_v46 = vpop.eup %5143 }
 0x7bf   :  { %4866 = vmatmul.mubr.msk.f32.vlgmr.msra.gmra.mxu0 %vm649_vm13, %v3255_v40  ;;  %4867 = vmatmul.mubr.msk.f32.vlgmr.msra.gmra.mxu1 %vm649_vm13, %v3255_v40  ;;  %v3432_v43 = vmul.f32 %v5144_v46, %v5142_v42 }
 0x7c0   :  { %3467 = vmatpush1.msra.mxu0 %v5714_v45  ;;  %3500 = vmatprep.mubr.f32.mxu0 %v5307_v14 }
 0x7c1   :  { %3538 = vmatpush1.msra.mxu1 %v5718_v18  ;;  %3571 = vmatprep.mubr.f32.mxu1 %v5307_v14 }
 0x7c2   :  { %3608 = vmatprep.subr.mxu0 %v5722_v48  ;;  %3679 = vmatprep.subr.mxu1 %v5725_v21 }
 0x7c3   :  { %4871 = vmatmul.mubr.msk.f32.vlgmr.msra.gmra.mxu0 %vm649_vm13, %v3432_v43  ;;  %4872 = vmatmul.mubr.msk.f32.vlgmr.msra.gmra.mxu1 %vm649_vm13, %v3432_v43 }
 0x7c4   :  { %3609 = vmatpush1.msra.mxu0 %v5776_v47  ;;  %3642 = vmatprep.mubr.f32.mxu0 %v5307_v14 }
 0x7c5   :  { %3680 = vmatpush1.msra.mxu1 %v5780_v52  ;;  %3713 = vmatprep.mubr.f32.mxu1 %v5307_v14 }
 0x7c6   :  { %3777 = vmatprep.subr.mxu0 %v5734_v22  ;;  %3848 = vmatprep.subr.mxu1 %v5737_v25 }
 0x7c7   :  { %4873 = vmatmul.mubr.msk.f32.vlgmr.msra.gmra.mxu0 %vm649_vm13, %v3432_v43  ;;  %4874 = vmatmul.mubr.msk.f32.vlgmr.msra.gmra.mxu1 %vm649_vm13, %v3432_v43 }
 0x7c8   :  { %3778 = vmatpush1.msra.mxu0 %v5742_v26  ;;  %3811 = vmatprep.mubr.f32.mxu0 %v5307_v14 }
 0x7c9   :  { %3849 = vmatpush1.msra.mxu1 %v5746_v7  ;;  %3882 = vmatprep.mubr.f32.mxu1 %v5307_v14 }
 0x7ca   :  { %3954 = vmatprep.subr.mxu0 %v5696_v33  ;;  %4025 = vmatprep.subr.mxu1 %v5751_v8 }
 0x87f   :  { %v3325_v53 = vpop.f32.mrf.mxu0  ;;  %v3396_v23 = vpop.f32.mrf.mxu1 }
 0x880   :  { %v3326_v3 = vadd.f32 %v3325_v53, %v5574_v15  ;;  %v3397_v20 = vadd.f32 %v3396_v23, %v5589_v41 }
 0x881   :  { %v3327_v54 = vpop.f32.mrf.mxu0  ;;  %v3398_v55 = vpop.f32.mrf.mxu1 }
 0x882   :  { %v3328_v33 = vadd.f32 %v3327_v54, %v5578_v19  ;;  %v3399_v36 = vadd.f32 %v3398_v55, %v5584_v30 }
 0x883   :  { %v3502_v24 = vpop.f32.mrf.mxu0  ;;  %v3573_v57 = vpop.f32.mrf.mxu1 }
 0x884   :  { %v3893_v58 = vadd.f32 %v3889_v56, %v3502_v24  ;;  %v3895_v6 = vadd.f32 %v3891_v50, %v3573_v57 }
 0x885   :  { %v3504_v59 = vpop.f32.mrf.mxu0  ;;  %v3575_v0 = vpop.f32.mrf.mxu1 }
 0x886   :  { %v4880_v60 = vmul.f32 -1.442695, %v3893_v58  ;;  %v3894_v62 = vadd.f32 %v3890_v61, %v3504_v59  ;;  %v3896_v28 = vadd.f32 %v3892_v34, %v3575_v0 }
 0x887   :  { %v3644_v4 = vpop.f32.mrf.mxu0  ;;  %v3715_v12 = vpop.f32.mrf.mxu1 }
 0x888   :  { %5145 = vpow2.f32 %v4880_v60  ;;  %v4881_v8 = vmul.f32 -1.442695, %v3894_v62  ;;  %v3645_v10 = vadd.f32 %v3644_v4, %v3326_v3  ;;  %v3716_v29 = vadd.f32 %v3715_v12, %v3397_v20 }
 0x889   :  { %v3646_v11 = vpop.f32.mrf.mxu0  ;;  %v3717_v32 = vpop.f32.mrf.mxu1  ;;  %v4882_v38 = vmul.f32 -1.442695, %v3896_v28 }
 0x88a   :  { %5147 = vpow2.f32 %v4881_v8  ;;  %v4875_v1 = vmul.f32 -1.442695, %v3645_v10  ;;  %v3647_v13 = vadd.f32 %v3646_v11, %v3328_v33  ;;  %v3718_v49 = vadd.f32 %v3717_v32, %v3399_v36  ;;  %v4377_v8 = vld [vmem:[#allocation2 + $0xa0] sm:$0x3] }
 0x88c   :  { %5149 = vpow2.f32 %v4875_v1  ;;  %v4876_v51 = vmul.f32 -1.442695, %v3647_v13  ;;  %v4877_v17 = vmul.f32 -1.442695, %v3718_v49 }
 0x88e   :  { %5151 = vpow2.f32 %v4876_v51 }
 0x88f   :  { %5153 = vtanh.f32 %v3895_v6 }
 0x890   :  { %5155 = vpow2.f32 %v4877_v17 }
 0x895   :  { %v5146_v16 = vpop.eup %5145 }
 0x896   :  { %v3900_v27 = vadd.f32 1.0, %v5146_v16 }
 0x897   :  { %v5148_v9 = vpop.eup %5147 }
 0x898   :  { %v3906_v63 = vadd.f32 1.0, %v5148_v9  ;;  %v4380_v9 = vld [vmem:[#allocation2 + $0x98] sm:$0x3] }
 0x899   :  { %v5150_v5 = vpop.eup %5149 }
 0x89a   :  { %5157 = vrcp.f32 %v3906_v63  ;;  %v3723_v2 = vadd.f32 1.0, %v5150_v5  ;;  %v4379_v5 = vld [vmem:[#allocation2 + $0x20] sm:$0x3] }
 0x89b   :  { %v5152_v31 = vpop.eup %5151  ;;  %5159 = vrcp.f32 %v3900_v27 }
 0x89c   :  { %5161 = vrcp.f32 %v3723_v2  ;;  %v3729_v39 = vadd.f32 1.0, %v5152_v31  ;;  %v5154_v44 = vpop.eup %5153 }
 0x89d   :  { %5163 = vtanh.f32 %v3716_v29  ;;  %v5156_v40 = vpop.eup %5155 }
 0x89e   :  { %5165 = vrcp.f32 %v3729_v39  ;;  %v3736_v55 = vadd.f32 1.0, %v5156_v40 }
 0x89f   :  { %5167 = vpow2.f32 %v4882_v38 }
 0x8a0   :  { %5169 = vrcp.f32 %v3736_v55 }
 0x8a7   :  { %v5158_v42 = vpop.eup %5157 }
 0x8a8   :  { %v5160_v46 = vpop.eup %5159  ;;  %v3916_v23 = vmul.f32 %v5158_v42, %v5760_v35 }
 0x8a9   :  { %v5162_v43 = vpop.eup %5161  ;;  %v3917_v24 = vmul.f32 %v5160_v46, %v5154_v44 }
 0x8aa   :  { %v5164_v53 = vpop.eup %5163 }
 0x8ab   :  { %v5166_v54 = vpop.eup %5165  ;;  %v3740_v56 = vmul.f32 %v5164_v53, %v5162_v43  ;;  %v5800_v59 = vadd.f32 %v3917_v24, %v3916_v23 }
 0x8ac   :  { %v3739_v57 = vmul.f32 %v5166_v54, %v5762_v37  ;;  %v5168_v58 = vpop.eup %5167 }
 0x8ad   :  { %v3913_v3 = vadd.f32 1.0, %v5168_v58  ;;  %v5170_v60 = vpop.eup %5169 }
 0x8ae   :  { %v5802_v61 = vadd.f32 %v3740_v56, %v3739_v57 }
 0x8b0   :  { %5171 = vtanh.f32 %v5802_v61 }
 0x8b1   :  { %5173 = vtanh.f32 %v5800_v59 }
 0x8b2   :  { %5175 = vrcp.f32 %v3913_v3 }
 0x8bd   :  { %v5172_v35 = vpop.eup %5171 }
 0x8be   :  { %v3743_v62 = vmul.f32 %v5172_v35, %v5170_v60  ;;  %v5174_v0 = vpop.eup %5173 }
 0x8bf   :  { %v5176_v37 = vpop.eup %5175 }
 0x8c0   :  { %4878 = vmatmul.mubr.msk.f32.vlgmr.msra.gmra.mxu0 %vm649_vm13, %v3743_v62  ;;  %4879 = vmatmul.mubr.msk.f32.vlgmr.msra.gmra.mxu1 %vm649_vm13, %v3743_v62  ;;  %v3920_v4 = vmul.f32 %v5176_v37, %v5174_v0 }
 0x8c1   :  { %3955 = vmatpush1.msra.mxu0 %v5714_v45  ;;  %3988 = vmatprep.mubr.f32.mxu0 %v5307_v14 }
 0x8c2   :  { %4026 = vmatpush1.msra.mxu1 %v5718_v18  ;;  %4059 = vmatprep.mubr.f32.mxu1 %v5307_v14 }
 0x8c3   :  { %4096 = vmatprep.subr.mxu0 %v5722_v48  ;;  %4167 = vmatprep.subr.mxu1 %v5725_v21 }
 0x8c4   :  { %4883 = vmatmul.mubr.msk.f32.vlgmr.msra.gmra.mxu0 %vm649_vm13, %v3920_v4  ;;  %4884 = vmatmul.mubr.msk.f32.vlgmr.msra.gmra.mxu1 %vm649_vm13, %v3920_v4 }
 0x8c5   :  { %4097 = vmatpush1.msra.mxu0 %v5776_v47  ;;  %4130 = vmatprep.mubr.f32.mxu0 %v5307_v14 }
 0x8c6   :  { %4168 = vmatpush1.msra.mxu1 %v5780_v52  ;;  %4201 = vmatprep.mubr.f32.mxu1 %v5307_v14 }
 0x8c7   :  { %4265 = vmatprep.subr.mxu0 %v5734_v22  ;;  %4336 = vmatprep.subr.mxu1 %v5737_v25 }
 0x8c8   :  { %4885 = vmatmul.mubr.msk.f32.vlgmr.msra.gmra.mxu0 %vm649_vm13, %v3920_v4  ;;  %4886 = vmatmul.mubr.msk.f32.vlgmr.msra.gmra.mxu1 %vm649_vm13, %v3920_v4 }
 0x8c9   :  { %4266 = vmatpush1.msra.mxu0 %v5742_v26  ;;  %4299 = vmatprep.mubr.f32.mxu0 %v5307_v14  ;;  %v4378_v26 = vld [vmem:[#allocation2 + $0xf8] sm:$0x3] }
 0x8ca   :  { %4337 = vmatpush1.msra.mxu1 %v5746_v7  ;;  %4370 = vmatprep.mubr.f32.mxu1 %v5307_v14 }
 0x8cb   :  { %4442 = vmatprep.subr.mxu0 %v5722_v48  ;;  %4513 = vmatprep.subr.mxu1 %v5725_v21 }
 0x980   :  { %v3813_v45 = vpop.f32.mrf.mxu0  ;;  %v3884_v18 = vpop.f32.mrf.mxu1 }
 0x981   :  { %v3814_v12 = vadd.f32 %v3813_v45, %v5574_v15  ;;  %v3885_v39 = vadd.f32 %v3884_v18, %v5589_v41 }
 0x982   :  { %v3815_v22 = vpop.f32.mrf.mxu0  ;;  %v3886_v25 = vpop.f32.mrf.mxu1 }
 0x983   :  { %v3816_v32 = vadd.f32 %v3815_v22, %v5578_v19  ;;  %v3887_v34 = vadd.f32 %v3886_v25, %v5584_v30 }
 0x984   :  { %v3990_v33 = vpop.f32.mrf.mxu0  ;;  %v4061_v11 = vpop.f32.mrf.mxu1 }
 0x985   :  { %v4381_v10 = vadd.f32 %v4377_v8, %v3990_v33  ;;  %v4383_v2 = vadd.f32 %v4379_v5, %v4061_v11  ;;  %v4595_v11 = vld [vmem:[%s5927_s5 + $0x38] sm:$0xff] }
 0x986   :  { %v3992_v1 = vpop.f32.mrf.mxu0  ;;  %v4063_v21 = vpop.f32.mrf.mxu1 }
 0x987   :  { %v4892_v13 = vmul.f32 -1.442695, %v4381_v10  ;;  %v4382_v7 = vadd.f32 %v4378_v26, %v3992_v1  ;;  %v4384_v20 = vadd.f32 %v4380_v9, %v4063_v21  ;;  %v4594_v1 = vld [vmem:[%s5927_s5 + $0x30] sm:$0xff]  ;;  %v4593_v26 = vld [vmem:[%s5927_s5 + $0x28] sm:$0xff] }
 0x988   :  { %v4132_v51 = vpop.f32.mrf.mxu0  ;;  %v4203_v16 = vpop.f32.mrf.mxu1 }
 0x989   :  { %5177 = vpow2.f32 %v4892_v13  ;;  %v4893_v48 = vmul.f32 -1.442695, %v4382_v7  ;;  %v4133_v36 = vadd.f32 %v4132_v51, %v3814_v12  ;;  %v4894_v63 = vmul.f32 -1.442695, %v4384_v20  ;;  %v4592_v12 = vld [vmem:[%s5927_s5 + $0x20] sm:$0xff]  ;;  %v4591_v13 = vld [vmem:[%s5927_s5 + $0x18] sm:$0xff] }
 0x98a   :  { %v4134_v49 = vpop.f32.mrf.mxu0  ;;  %v4205_v27 = vpop.f32.mrf.mxu1  ;;  %v4204_v46 = vadd.f32 %v4203_v16, %v3885_v39 }
 0x98b   :  { %5179 = vpow2.f32 %v4893_v48  ;;  %v4887_v50 = vmul.f32 -1.442695, %v4133_v36  ;;  %v4135_v6 = vadd.f32 %v4134_v49, %v3816_v32  ;;  %v4206_v28 = vadd.f32 %v4205_v27, %v3887_v34 }
 0x98d   :  { %5181 = vpow2.f32 %v4887_v50  ;;  %v4888_v17 = vmul.f32 -1.442695, %v4135_v6  ;;  %v4889_v44 = vmul.f32 -1.442695, %v4206_v28 }
 0x98f   :  { %5183 = vpow2.f32 %v4888_v17 }
 0x990   :  { %5185 = vpow2.f32 %v4894_v63 }
 0x996   :  { %v5178_v29 = vpop.eup %5177 }
 0x997   :  { %v4388_v31 = vadd.f32 1.0, %v5178_v29 }
 0x998   :  { %v5180_v38 = vpop.eup %5179 }
 0x999   :  { %5187 = vrcp.f32 %v4388_v31  ;;  %v4394_v40 = vadd.f32 1.0, %v5180_v38 }
 0x99a   :  { %v5182_v42 = vpop.eup %5181  ;;  %5189 = vtanh.f32 %v4383_v2 }
 0x99b   :  { %5191 = vrcp.f32 %v4394_v40  ;;  %v4211_v43 = vadd.f32 1.0, %v5182_v42 }
 0x99c   :  { %v5184_v53 = vpop.eup %5183  ;;  %5193 = vpow2.f32 %v4889_v44 }
 0x99d   :  { %5195 = vrcp.f32 %v4211_v43  ;;  %v4217_v23 = vadd.f32 1.0, %v5184_v53  ;;  %v5186_v54 = vpop.eup %5185 }
 0x99e   :  { %5197 = vtanh.f32 %v4204_v46  ;;  %v4401_v57 = vadd.f32 1.0, %v5186_v54 }
 0x99f   :  { %5199 = vrcp.f32 %v4217_v23 }
 0x9a0   :  { %5201 = vrcp.f32 %v4401_v57  ;;  %v4903_v57 = vld [vmem:[%s5927_s5 + $0x48] ss:$0 sm:$0xff] }
 0x9a6   :  { %v5188_v55 = vpop.eup %5187 }
 0x9a7   :  { %v5190_v24 = vpop.eup %5189 }
 0x9a8   :  { %v5192_v56 = vpop.eup %5191  ;;  %v4405_v3 = vmul.f32 %v5190_v24, %v5188_v55  ;;  %v4590_v24 = vld [vmem:[%s5927_s5 + $0x10] sm:$0xff] }
 0x9a9   :  { %v5194_v58 = vpop.eup %5193  ;;  %v4404_v60 = vmul.f32 %v5192_v56, %v5800_v59  ;;  %v4589_v56 = vld [vmem:[%s5927_s5 + $0x8] sm:$0xff] }
 0x9aa   :  { %v5196_v35 = vpop.eup %5195  ;;  %v4224_v4 = vadd.f32 1.0, %v5194_v58 }
 0x9ab   :  { %v5198_v62 = vpop.eup %5197  ;;  %v4406_v0 = vadd.f32 %v4405_v3, %v4404_v60 }
 0x9ac   :  { %v5200_v37 = vpop.eup %5199  ;;  %v4228_v45 = vmul.f32 %v5198_v62, %v5196_v35  ;;  %v4905_v35 = vld [vmem:[%s5927_s5 + $0x49] ss:$0 sm:$0xff] }
 0x9ad   :  { %5203 = vtanh.f32 %v4406_v0  ;;  %v4227_v18 = vmul.f32 %v5200_v37, %v5802_v61  ;;  %4901 = vst.msk [vmem:[%s5929_s7 + $0x4] sm:$0x3] %vm4578_vm14, %v4406_v0  ;;  %v5202_v59 = vpop.eup %5201 }
 0x9ae   :  { %5205 = vrcp.f32 %v4224_v4 }
 0x9af   :  { %v5840_v22 = vadd.f32 %v4228_v45, %v4227_v18 }
 0x9b1   :  { %5207 = vtanh.f32 %v5840_v22 }
 0x9ba   :  { %v5204_v25 = vpop.eup %5203 }
 0x9bb   :  { %v5843_v33 = vmul.f32 %v5204_v25, %v5202_v59  ;;  %v5206_v8 = vpop.eup %5205 }
 0x9bd   :  { %4579 = vst.msk [vmem:[%s5929_s7] sm:$0x3] %vm4578_vm14, %v5843_v33 }
 0x9be   :  { %v5208_v61 = vpop.eup %5207 }
 0x9bf   :  { %v4231_v10 = vmul.f32 %v5208_v61, %v5206_v8 }
 0x9c1   :  { %4890 = vmatmul.mubr.msk.f32.vlgmr.msra.gmra.mxu0 %vm649_vm13, %v4231_v10  ;;  %4891 = vmatmul.mubr.msk.f32.vlgmr.msra.gmra.mxu1 %vm649_vm13, %v4231_v10 }
 0x9c2   :  { %4443 = vmatpush1.msra.mxu0 %v5776_v47  ;;  %4476 = vmatprep.mubr.f32.mxu0 %v5307_v14  ;;  %v4588_v47 = vld [vmem:[%s5927_s5] sm:$0xff] }
 0x9c3   :  { %4514 = vmatpush1.msra.mxu1 %v5780_v52  ;;  %4547 = vmatprep.mubr.f32.mxu1 %v5307_v14  ;;  %v4596_v52 = vld [vmem:[%s5927_s5 + $0x40] sm:$0xff] }
 0x9c4   :  { %4918 = vmatprep.subr.mxu0 %v5307_v14  ;;  %4923 = vmatprep.subr.mxu1 %v5307_v14 }
 0x9c5   :  { %4895 = vmatmul.mubr.msk.f32.vlgmr.msra.gmra.mxu0 %vm649_vm13, %v5843_v33  ;;  %4896 = vmatmul.mubr.msk.f32.vlgmr.msra.gmra.mxu1 %vm649_vm13, %v5843_v33 }
 0x9c6   :  { %4919 = vmatpush3.msra.mxu0 %v4588_v47  ;;  %4920 = vmatprep.mubr.msk.f32.mxu0 %vm5308_vm15, %v5307_v14 }
 0x9c7   :  { %4939 = vmatprep.mubr.msk.f32.mxu1 %vm5308_vm15, %v5307_v14  ;;  %4924 = vmatpush3.msra.mxu1 %v4596_v52 }
 0x9c8   :  { %4925 = vmatprep.subr.mxu1 %v5307_v14 }
 0x9c9   :  { %4926 = vmatpush3.msra.mxu1 %v4595_v11 }
 0x9ca   :  { %4927 = vmatprep.subr.mxu1 %v5307_v14 }
 0x9cb   :  { %4928 = vmatpush3.msra.mxu1 %v4594_v1 }
 0x9cc   :  { %4929 = vmatprep.subr.mxu1 %v5307_v14 }
 0x9cd   :  { %4930 = vmatpush3.msra.mxu1 %v4593_v26 }
 0x9ce   :  { %4931 = vmatprep.subr.mxu1 %v5307_v14 }
 0x9cf   :  { %4932 = vmatpush3.msra.mxu1 %v4592_v12 }
 0x9d0   :  { %4933 = vmatprep.subr.mxu1 %v5307_v14 }
 0x9d1   :  { %4934 = vmatpush3.msra.mxu1 %v4591_v13 }
 0x9d2   :  { %4935 = vmatprep.subr.mxu1 %v5307_v14 }
 0x9d3   :  { %4936 = vmatpush3.msra.mxu1 %v4590_v24 }
 0x9d4   :  { %4937 = vmatprep.subr.mxu1 %v5307_v14 }
 0x9d5   :  { %4938 = vmatpush3.msra.mxu1 %v4589_v56 }
 0xa81   :  { %v4301_v7 = vpop.f32.mrf.mxu0  ;;  %v4372_v51 = vpop.f32.mrf.mxu1 }
 0xa82   :  { %v4302_v48 = vadd.f32 %v4301_v7, %v5574_v15  ;;  %v4373_v28 = vadd.f32 %v4372_v51, %v5589_v41 }
 0xa83   :  { %v4303_v32 = vpop.f32.mrf.mxu0  ;;  %v4374_v49 = vpop.f32.mrf.mxu1 }
 0xa84   :  { %v4304_v36 = vadd.f32 %v4303_v32, %v5578_v19  ;;  %v4375_v34 = vadd.f32 %v4374_v49, %v5584_v30 }
 0xa85   :  { %v4478_v21 = vpop.f32.mrf.mxu0  ;;  %v4549_v9 = vpop.f32.mrf.mxu1 }
 0xa86   :  { %v4479_v50 = vadd.f32 %v4478_v21, %v4302_v48  ;;  %v4550_v29 = vadd.f32 %v4549_v9, %v4373_v28 }
 0xa87   :  { %v4480_v6 = vpop.f32.mrf.mxu0  ;;  %v4551_v27 = vpop.f32.mrf.mxu1 }
 0xa88   :  { %v4897_v16 = vmul.f32 -1.442695, %v4479_v50  ;;  %v4481_v17 = vadd.f32 %v4480_v6, %v4304_v36  ;;  %v4552_v63 = vadd.f32 %v4551_v27, %v4375_v34 }
 0xa8a   :  { %5209 = vpow2.f32 %v4897_v16  ;;  %v4898_v20 = vmul.f32 -1.442695, %v4481_v17  ;;  %v4899_v5 = vmul.f32 -1.442695, %v4552_v63 }
 0xa8c   :  { %5211 = vpow2.f32 %v4898_v20 }
 0xa8d   :  { %5213 = vpow2.f32 %v4899_v5 }
 0xa97   :  { %v5210_v15 = vpop.eup %5209 }
 0xa98   :  { %v4557_v2 = vadd.f32 1.0, %v5210_v15 }
 0xa99   :  { %v5212_v19 = vpop.eup %5211 }
 0xa9a   :  { %5215 = vrcp.f32 %v4557_v2  ;;  %v4563_v31 = vadd.f32 1.0, %v5212_v19  ;;  %v5214_v38 = vpop.eup %5213 }
 0xa9b   :  { %5217 = vtanh.f32 %v4550_v29  ;;  %v4570_v42 = vadd.f32 1.0, %v5214_v38 }
 0xa9c   :  { %5219 = vrcp.f32 %v4563_v31 }
 0xa9d   :  { %5221 = vrcp.f32 %v4570_v42 }
 0xaa7   :  { %v5216_v39 = vpop.eup %5215 }
 0xaa8   :  { %v5218_v44 = vpop.eup %5217 }
 0xaa9   :  { %v5220_v40 = vpop.eup %5219  ;;  %v4574_v46 = vmul.f32 %v5218_v44, %v5216_v39 }
 0xaaa   :  { %v4573_v30 = vmul.f32 %v5220_v40, %v5840_v22  ;;  %v5222_v41 = vpop.eup %5221 }
 0xaac   :  { %v4575_v43 = vadd.f32 %v4574_v46, %v4573_v30 }
 0xaae   :  { %5223 = vtanh.f32 %v4575_v43  ;;  %4902 = vst.msk [vmem:[%s5929_s7 + $0x6] sm:$0x3] %vm4578_vm14, %v4575_v43 }
 0xabb   :  { %v5224_v53 = vpop.eup %5223 }
 0xabc   :  { %v4577_v23 = vmul.f32 %v5224_v53, %v5222_v41 }
 0xabe   :  { %4900 = vst.msk [vmem:[%s5929_s7 + $0x2] sm:$0x3] %vm4578_vm14, %v4577_v23  ;;  %v4586_v54 = vadd.f32 %v4577_v23, %v5843_v33 }
 0xac0   :  { %v4587_v55 = vmul.f32 0.5, %v4586_v54 }
 0xac2   :  { %4921 = vmatmul.mubr.msk.f32.vlgmr.msra.gmra.mxu0 %vm649_vm13, %v4587_v55 }
 0xb82   :  { %v4672_v58 = vpop.f32.mrf.mxu0 }
 0xb83   :  { %v4673_v3 = vadd.f32 %v4903_v57, %v4672_v58 }
 0xb84   :  { %v4922_v60 = vpop.f32.mrf.mxu0 }
 0xb85   :  { %4940 = vmatmul.mubr.msk.f32.vlgmr.msra.gmra.mxu1 %vm4680_vm0, %v4673_v3 }
 0xc45   :  { %v4750_v62 = vpop.f32.mrf.mxu1 }
 0xc46   :  { %v4751_v0 = vadd.f32 %v4905_v35, %v4750_v62 }
 0xc47   :  { %v4941_v14 = vpop.f32.mrf.mxu1 }
 0xc48   :  { %4754 = vst [vmem:[#allocation8] sm:$0x3] %v4751_v0 }
 0xc49   :  { %5288 = shalt.err (!%p5285_p0)
}
 0xc4a   :  { %4764 = dma.vmem_to_hbm [thread:$0]  %s4762_s16, 32, %s5928_s6, [#allocation5]  }
 0xc4b   :  { %5301 = dma.done.wait [#allocation5], 32  }
 0xc4c   :  { %5302 = vsyncadd [#allocation5], 4294967264 }
 0xc4d   :  { %4772 = vsyncpa [#allocation4], 1 }
 0xc4e   :  { %4773 = vsyncpa [#allocation7], 1 }
 0xc4f   :  { %4774 = vsyncpa [#allocation5], 1 }

</bundles_post_ra>
